<compile_context>
chip_gen: v7x
topology: tpu7x:2x2x1
jax: 0.10.0
libtpu: 0.0.40
codegen_flags: <defaults>
</compile_context>

<pallas_src>
import jax
import jax.numpy as jnp
from jax.experimental import pallas as pl
from jax.experimental.pallas import tpu as pltpu


_TB = 128  # batch rows per grid step (lane width -> lane-dense outputs)


def _make_discriminator_kernel(margin: float, tb: int):
    def kernel(idx_ref, take_ref, ent_hbm, rel_hbm, loss_ref, nscore_ref,
               rows, sem):
        # idx_ref : SMEM (6, B_pad) i32   [pos_h, pos_r, pos_t, neg_h, neg_r, neg_t]
        # take_ref: VMEM (1, tb) f32 mask tile
        # ent_hbm : HBM (E, D) f32, rel_hbm: HBM (R, D) f32
        # loss_ref: VMEM (1, 1) f32 (resident accumulator)
        # nscore_ref: VMEM (1, tb) f32
        # rows    : VMEM (6, tb, D) f32 gather buffer
        # sem     : single DMA semaphore shared by all row copies
        i = pl.program_id(0)

        @pl.when(i == 0)
        def _init():
            loss_ref[...] = jnp.zeros_like(loss_ref)

        base = i * tb

        # Issue all row-gather DMAs for this tile (6 streams x tb rows). All
        # copies move the same number of bytes, so the drain waits below are
        # interchangeable.
        @pl.loop(0, tb)
        def _issue(r):
            b = base + r
            pltpu.make_async_copy(ent_hbm.at[idx_ref[0, b]], rows.at[0, r], sem).start()
            pltpu.make_async_copy(rel_hbm.at[idx_ref[1, b]], rows.at[1, r], sem).start()
            pltpu.make_async_copy(ent_hbm.at[idx_ref[2, b]], rows.at[2, r], sem).start()
            pltpu.make_async_copy(ent_hbm.at[idx_ref[3, b]], rows.at[3, r], sem).start()
            pltpu.make_async_copy(rel_hbm.at[idx_ref[4, b]], rows.at[4, r], sem).start()
            pltpu.make_async_copy(ent_hbm.at[idx_ref[5, b]], rows.at[5, r], sem).start()

        # Drain: wait for all 6*tb row copies using a same-shaped descriptor.
        @pl.loop(0, 6 * tb)
        def _drain(_):
            pltpu.make_async_copy(ent_hbm.at[0], rows.at[0, 0], sem).wait()

        g = rows[...]                                               # (6, tb, D) f32
        p_score = jnp.sum(jnp.abs(g[0] + g[1] - g[2]), axis=-1)      # (tb,)
        n_score = jnp.sum(jnp.abs(g[3] + g[4] - g[5]), axis=-1)      # (tb,)

        # MarginRankingLoss with y=-1, reduction='sum', restricted to `take`
        # (equivalent to masked_select on both scores, then summed hinge).
        hinge = jnp.maximum(p_score - n_score + margin, 0.0)          # (tb,)
        masked = take_ref[...] * hinge[None, :]                       # (1, tb)
        loss_ref[...] += jnp.sum(masked, axis=-1, keepdims=True)      # (1, 1)
        nscore_ref[...] = n_score[None, :]

    return kernel


def discriminator_forward(ent_emb, rel_emb, pos, neg, take, margin=1.0):
    """pos/neg: tuples of (h, r, t) int vectors of shape (B,); take: (B,) bool."""
    pos_h, pos_r, pos_t = pos
    neg_h, neg_r, neg_t = neg
    B = pos_h.shape[0]
    E, D = ent_emb.shape
    R = rel_emb.shape[0]

    tb = _TB
    b_pad = ((B + tb - 1) // tb) * tb
    pad = b_pad - B

    idx = jnp.stack(
        [pos_h, pos_r, pos_t, neg_h, neg_r, neg_t], axis=0
    ).astype(jnp.int32)                                            # (6, B)
    # Clamp to valid vocab range (DMA-gather OOB is not runtime checked).
    hi = jnp.array([E - 1, R - 1, E - 1, E - 1, R - 1, E - 1],
                   dtype=jnp.int32)[:, None]
    idx = jnp.clip(idx, 0, hi)
    idx = jnp.pad(idx, ((0, 0), (0, pad)))                          # (6, B_pad)

    take_f = jnp.pad(take.astype(jnp.float32), (0, pad))[None, :]   # (1, B_pad)

    kernel = _make_discriminator_kernel(float(margin), tb)

    grid_spec = pltpu.PrefetchScalarGridSpec(
        num_scalar_prefetch=1,
        grid=(b_pad // tb,),
        in_specs=[
            pl.BlockSpec((1, tb), lambda i, _idx: (0, i)),   # take mask tile
            pl.BlockSpec(memory_space=pl.ANY),               # ent table (HBM)
            pl.BlockSpec(memory_space=pl.ANY),               # rel table (HBM)
        ],
        out_specs=(
            pl.BlockSpec((1, 1), lambda i, _idx: (0, 0)),    # resident loss acc
            pl.BlockSpec((1, tb), lambda i, _idx: (0, i)),   # n_score tile
        ),
        scratch_shapes=[
            pltpu.VMEM((6, tb, D), jnp.float32),             # gathered rows
            pltpu.SemaphoreType.DMA,                         # shared DMA sem
        ],
    )

    loss, n_score = pl.pallas_call(
        kernel,
        grid_spec=grid_spec,
        out_shape=(
            jax.ShapeDtypeStruct((1, 1), jnp.float32),
            jax.ShapeDtypeStruct((1, b_pad), jnp.float32),
        ),
        compiler_params=pltpu.CompilerParams(
            dimension_semantics=("arbitrary",)),
    )(idx, take_f, ent_emb.astype(jnp.float32), rel_emb.astype(jnp.float32))

    return loss[0, 0], n_score[0, :B]


def _xavier_uniform(key, shape, dtype=jnp.float32):
    # match torch.nn.init.xavier_uniform_: gain=1, bound = sqrt(6/(fan_in+fan_out))
    bound = (6.0 / (shape[0] + shape[1])) ** 0.5
    return jax.random.uniform(key, shape, dtype, minval=-bound, maxval=bound)


if __name__ == "__main__":
    # Small, deterministic setup consistent with the module's __init__.
    ent_size, rel_size, latent_dim = 64, 16, 128
    batch = 8
    margin = 1.0

    key = jax.random.PRNGKey(0)
    k_ent, k_rel, k1, k2, k3, k4, k5, k6, k7 = jax.random.split(key, 9)

    ent_emb = _xavier_uniform(k_ent, (ent_size, latent_dim))
    rel_emb = _xavier_uniform(k_rel, (rel_size, latent_dim))

    pos_h = jax.random.randint(k1, (batch,), 0, ent_size, jnp.int32)
    pos_r = jax.random.randint(k2, (batch,), 0, rel_size, jnp.int32)
    pos_t = jax.random.randint(k3, (batch,), 0, ent_size, jnp.int32)
    neg_h = jax.random.randint(k4, (batch,), 0, ent_size, jnp.int32)
    neg_r = jax.random.randint(k5, (batch,), 0, rel_size, jnp.int32)
    neg_t = jax.random.randint(k6, (batch,), 0, ent_size, jnp.int32)
    take = jax.random.bernoulli(k7, 0.75, (batch,))

    loss, n_score = discriminator_forward(
        ent_emb, rel_emb, (pos_h, pos_r, pos_t), (neg_h, neg_r, neg_t), take,
        margin=margin,
    )
    jax.block_until_ready((loss, n_score))

    # Pure-JAX reference for sanity checking.
    def ref_forward():
        p_h, p_t, p_r = ent_emb[pos_h], ent_emb[pos_t], rel_emb[pos_r]
        n_h, n_t, n_r = ent_emb[neg_h], ent_emb[neg_t], rel_emb[neg_r]
        p = jnp.sum(jnp.abs(p_h + p_r - p_t), axis=-1)
        n = jnp.sum(jnp.abs(n_h + n_r - n_t), axis=-1)
        tf = take.astype(jnp.float32)
        l = jnp.sum(tf * jnp.maximum(p - n + margin, 0.0))
        return l, n

    ref_loss, ref_n = ref_forward()
    assert jnp.allclose(loss, ref_loss, atol=1e-4, rtol=1e-4), (loss, ref_loss)
    assert jnp.allclose(n_score, ref_n, atol=1e-4, rtol=1e-4)

    print("KERNEL_OK")
</pallas_src>

<mosaic_0001>
module attributes {stable_mosaic.version = 11 : i64} {
  func.func @kernel(%arg0: i32, %arg1: memref<6x128xi32, #tpu.memory_space<smem>>, %arg2: memref<1x128xf32, #tpu.memory_space<vmem>>, %arg3: memref<64x128xf32, #tpu.memory_space<any>>, %arg4: memref<16x128xf32, #tpu.memory_space<any>>, %arg5: memref<1x1xf32, #tpu.memory_space<vmem>>, %arg6: memref<1x128xf32, #tpu.memory_space<vmem>>, %arg7: memref<6x128x128xf32, #tpu.memory_space<vmem>>, %arg8: memref<!tpu.dma_semaphore, #tpu.memory_space<semaphore_mem>>) attributes {dimension_semantics = [#tpu.dimension_semantics<arbitrary>], iteration_bounds = array<i64: 1>, scalar_prefetch = 1 : i64, scratch_operands = 2 : i64, tpu.core_type = #tpu.core_type<tc>, window_params = [{transform_indices = @transform_0, window_bounds = array<i64: 1, 128>}, {}, {}, {pipeline_mode = #tpu.pipeline_mode<synchronous>, transform_indices = @transform_3, window_bounds = array<i64: 1, 1>}, {transform_indices = @transform_4, window_bounds = array<i64: 1, 128>}]} {
    %c0_i32 = arith.constant 0 : i32
    %0 = arith.cmpi eq, %arg0, %c0_i32 : i32
    %1 = arith.extui %0 : i1 to i32
    %c0_i32_0 = arith.constant 0 : i32
    %2 = arith.cmpi ne, %1, %c0_i32_0 : i32
    scf.if %2 {
      %cst_20 = arith.constant 0.000000e+00 : f32
      %42 = vector.broadcast %cst_20 : f32 to vector<1x1xf32>
      %c0_21 = arith.constant 0 : index
      %c0_22 = arith.constant 0 : index
      %43 = vector.load %arg5[%c0_21, %c0_22] : memref<1x1xf32, #tpu.memory_space<vmem>>, vector<1x1xf32>
      tpu.vector_store %arg5[%c0_21, %c0_22], %42 {strides = array<i32>} : memref<1x1xf32, #tpu.memory_space<vmem>>, vector<1x1xf32>,
    } else {
    }
    %c128_i32 = arith.constant 128 : i32
    %3 = arith.muli %arg0, %c128_i32 : i32
    %c0_i32_1 = arith.constant 0 : i32
    %c128_i32_2 = arith.constant 128 : i32
    %4 = arith.addi %c0_i32_1, %c128_i32_2 : i32
    %c1_i32 = arith.constant 1 : i32
    scf.for %arg9 = %c0_i32_1 to %4 step %c1_i32  : i32 {
      %c1_i32_20 = arith.constant 1 : i32
      %42 = arith.muli %arg9, %c1_i32_20 : i32
      %c0_i32_21 = arith.constant 0 : i32
      %43 = arith.addi %c0_i32_21, %42 : i32
      %44 = arith.addi %3, %43 : i32
      %c0_22 = arith.constant 0 : index
      %45 = arith.index_cast %44 : i32 to index
      %46 = memref.load %arg1[%c0_22, %45] : memref<6x128xi32, #tpu.memory_space<smem>>
      %c0_i32_23 = arith.constant 0 : i32
      %c0_i32_24 = arith.constant 0 : i32
      %47 = tpu.memref_slice %arg3[%46, %c0_i32_24] : memref<64x128xf32, #tpu.memory_space<any>> -> memref<1x128xf32, #tpu.memory_space<any>>
      %48 = tpu.memref_squeeze %47 : memref<1x128xf32, #tpu.memory_space<any>> -> memref<128xf32, #tpu.memory_space<any>>
      %c0_i32_25 = arith.constant 0 : i32
      %49 = tpu.memref_slice %arg7[%c0_i32_23, %43, %c0_i32_25] : memref<6x128x128xf32, #tpu.memory_space<vmem>> -> memref<1x1x128xf32, #tpu.memory_space<vmem>>
      %50 = tpu.memref_squeeze %49 : memref<1x1x128xf32, #tpu.memory_space<vmem>> -> memref<128xf32, #tpu.memory_space<vmem>>
      tpu.enqueue_dma source(%48 : memref<128xf32, #tpu.memory_space<any>>) target(%50 : memref<128xf32, #tpu.memory_space<vmem>>) target_semaphore(%arg8 : memref<!tpu.dma_semaphore, #tpu.memory_space<semaphore_mem>>)
      %c1 = arith.constant 1 : index
      %51 = arith.index_cast %44 : i32 to index
      %52 = memref.load %arg1[%c1, %51] : memref<6x128xi32, #tpu.memory_space<smem>>
      %c1_i32_26 = arith.constant 1 : i32
      %c0_i32_27 = arith.constant 0 : i32
      %53 = tpu.memref_slice %arg4[%52, %c0_i32_27] : memref<16x128xf32, #tpu.memory_space<any>> -> memref<1x128xf32, #tpu.memory_space<any>>
      %54 = tpu.memref_squeeze %53 : memref<1x128xf32, #tpu.memory_space<any>> -> memref<128xf32, #tpu.memory_space<any>>
      %c0_i32_28 = arith.constant 0 : i32
      %55 = tpu.memref_slice %arg7[%c1_i32_26, %43, %c0_i32_28] : memref<6x128x128xf32, #tpu.memory_space<vmem>> -> memref<1x1x128xf32, #tpu.memory_space<vmem>>
      %56 = tpu.memref_squeeze %55 : memref<1x1x128xf32, #tpu.memory_space<vmem>> -> memref<128xf32, #tpu.memory_space<vmem>>
      tpu.enqueue_dma source(%54 : memref<128xf32, #tpu.memory_space<any>>) target(%56 : memref<128xf32, #tpu.memory_space<vmem>>) target_semaphore(%arg8 : memref<!tpu.dma_semaphore, #tpu.memory_space<semaphore_mem>>)
      %c2 = arith.constant 2 : index
      %57 = arith.index_cast %44 : i32 to index
      %58 = memref.load %arg1[%c2, %57] : memref<6x128xi32, #tpu.memory_space<smem>>
      %c2_i32 = arith.constant 2 : i32
      %c0_i32_29 = arith.constant 0 : i32
      %59 = tpu.memref_slice %arg3[%58, %c0_i32_29] : memref<64x128xf32, #tpu.memory_space<any>> -> memref<1x128xf32, #tpu.memory_space<any>>
      %60 = tpu.memref_squeeze %59 : memref<1x128xf32, #tpu.memory_space<any>> -> memref<128xf32, #tpu.memory_space<any>>
      %c0_i32_30 = arith.constant 0 : i32
      %61 = tpu.memref_slice %arg7[%c2_i32, %43, %c0_i32_30] : memref<6x128x128xf32, #tpu.memory_space<vmem>> -> memref<1x1x128xf32, #tpu.memory_space<vmem>>
      %62 = tpu.memref_squeeze %61 : memref<1x1x128xf32, #tpu.memory_space<vmem>> -> memref<128xf32, #tpu.memory_space<vmem>>
      tpu.enqueue_dma source(%60 : memref<128xf32, #tpu.memory_space<any>>) target(%62 : memref<128xf32, #tpu.memory_space<vmem>>) target_semaphore(%arg8 : memref<!tpu.dma_semaphore, #tpu.memory_space<semaphore_mem>>)
      %c3 = arith.constant 3 : index
      %63 = arith.index_cast %44 : i32 to index
      %64 = memref.load %arg1[%c3, %63] : memref<6x128xi32, #tpu.memory_space<smem>>
      %c3_i32 = arith.constant 3 : i32
      %c0_i32_31 = arith.constant 0 : i32
      %65 = tpu.memref_slice %arg3[%64, %c0_i32_31] : memref<64x128xf32, #tpu.memory_space<any>> -> memref<1x128xf32, #tpu.memory_space<any>>
      %66 = tpu.memref_squeeze %65 : memref<1x128xf32, #tpu.memory_space<any>> -> memref<128xf32, #tpu.memory_space<any>>
      %c0_i32_32 = arith.constant 0 : i32
      %67 = tpu.memref_slice %arg7[%c3_i32, %43, %c0_i32_32] : memref<6x128x128xf32, #tpu.memory_space<vmem>> -> memref<1x1x128xf32, #tpu.memory_space<vmem>>
      %68 = tpu.memref_squeeze %67 : memref<1x1x128xf32, #tpu.memory_space<vmem>> -> memref<128xf32, #tpu.memory_space<vmem>>
      tpu.enqueue_dma source(%66 : memref<128xf32, #tpu.memory_space<any>>) target(%68 : memref<128xf32, #tpu.memory_space<vmem>>) target_semaphore(%arg8 : memref<!tpu.dma_semaphore, #tpu.memory_space<semaphore_mem>>)
      %c4 = arith.constant 4 : index
      %69 = arith.index_cast %44 : i32 to index
      %70 = memref.load %arg1[%c4, %69] : memref<6x128xi32, #tpu.memory_space<smem>>
      %c4_i32 = arith.constant 4 : i32
      %c0_i32_33 = arith.constant 0 : i32
      %71 = tpu.memref_slice %arg4[%70, %c0_i32_33] : memref<16x128xf32, #tpu.memory_space<any>> -> memref<1x128xf32, #tpu.memory_space<any>>
      %72 = tpu.memref_squeeze %71 : memref<1x128xf32, #tpu.memory_space<any>> -> memref<128xf32, #tpu.memory_space<any>>
      %c0_i32_34 = arith.constant 0 : i32
      %73 = tpu.memref_slice %arg7[%c4_i32, %43, %c0_i32_34] : memref<6x128x128xf32, #tpu.memory_space<vmem>> -> memref<1x1x128xf32, #tpu.memory_space<vmem>>
      %74 = tpu.memref_squeeze %73 : memref<1x1x128xf32, #tpu.memory_space<vmem>> -> memref<128xf32, #tpu.memory_space<vmem>>
      tpu.enqueue_dma source(%72 : memref<128xf32, #tpu.memory_space<any>>) target(%74 : memref<128xf32, #tpu.memory_space<vmem>>) target_semaphore(%arg8 : memref<!tpu.dma_semaphore, #tpu.memory_space<semaphore_mem>>)
      %c5 = arith.constant 5 : index
      %75 = arith.index_cast %44 : i32 to index
      %76 = memref.load %arg1[%c5, %75] : memref<6x128xi32, #tpu.memory_space<smem>>
      %c5_i32 = arith.constant 5 : i32
      %c0_i32_35 = arith.constant 0 : i32
      %77 = tpu.memref_slice %arg3[%76, %c0_i32_35] : memref<64x128xf32, #tpu.memory_space<any>> -> memref<1x128xf32, #tpu.memory_space<any>>
      %78 = tpu.memref_squeeze %77 : memref<1x128xf32, #tpu.memory_space<any>> -> memref<128xf32, #tpu.memory_space<any>>
      %c0_i32_36 = arith.constant 0 : i32
      %79 = tpu.memref_slice %arg7[%c5_i32, %43, %c0_i32_36] : memref<6x128x128xf32, #tpu.memory_space<vmem>> -> memref<1x1x128xf32, #tpu.memory_space<vmem>>
      %80 = tpu.memref_squeeze %79 : memref<1x1x128xf32, #tpu.memory_space<vmem>> -> memref<128xf32, #tpu.memory_space<vmem>>
      tpu.enqueue_dma source(%78 : memref<128xf32, #tpu.memory_space<any>>) target(%80 : memref<128xf32, #tpu.memory_space<vmem>>) target_semaphore(%arg8 : memref<!tpu.dma_semaphore, #tpu.memory_space<semaphore_mem>>)
    }
    %c128_i32_3 = arith.constant 128 : i32
    %c0_i32_4 = arith.constant 0 : i32
    %c768_i32 = arith.constant 768 : i32
    %5 = arith.addi %c0_i32_4, %c768_i32 : i32
    %c1_i32_5 = arith.constant 1 : i32
    scf.for %arg9 = %c0_i32_4 to %5 step %c1_i32_5  : i32 {
      %c0_i32_20 = arith.constant 0 : i32
      %c0_i32_21 = arith.constant 0 : i32
      %c0_i32_22 = arith.constant 0 : i32
      %c0_i32_23 = arith.constant 0 : i32
      %42 = tpu.memref_slice %arg3[%c0_i32_20, %c0_i32_23] : memref<64x128xf32, #tpu.memory_space<any>> -> memref<1x128xf32, #tpu.memory_space<any>>
      %43 = tpu.memref_squeeze %42 : memref<1x128xf32, #tpu.memory_space<any>> -> memref<128xf32, #tpu.memory_space<any>>
      %c0_i32_24 = arith.constant 0 : i32
      %44 = tpu.memref_slice %arg7[%c0_i32_21, %c0_i32_22, %c0_i32_24] : memref<6x128x128xf32, #tpu.memory_space<vmem>> -> memref<1x1x128xf32, #tpu.memory_space<vmem>>
      %45 = tpu.memref_squeeze %44 : memref<1x1x128xf32, #tpu.memory_space<vmem>> -> memref<128xf32, #tpu.memory_space<vmem>>
      tpu.wait_dma2 semaphore(%arg8 : memref<!tpu.dma_semaphore, #tpu.memory_space<semaphore_mem>>) src(%43 : memref<128xf32, #tpu.memory_space<any>>) dst(%45 : memref<128xf32, #tpu.memory_space<vmem>>)
    }
    %c0 = arith.constant 0 : index
    %c0_6 = arith.constant 0 : index
    %c0_7 = arith.constant 0 : index
    %6 = vector.load %arg7[%c0, %c0_6, %c0_7] : memref<6x128x128xf32, #tpu.memory_space<vmem>>, vector<6x128x128xf32>
    %7 = vector.extract_strided_slice %6 {offsets = [0, 0, 0], sizes = [1, 128, 128], strides = [1, 1, 1]} : vector<6x128x128xf32> to vector<1x128x128xf32>
    %8 = vector.shape_cast %7 : vector<1x128x128xf32> to vector<128x128xf32>
    %9 = vector.extract_strided_slice %6 {offsets = [1, 0, 0], sizes = [1, 128, 128], strides = [1, 1, 1]} : vector<6x128x128xf32> to vector<1x128x128xf32>
    %10 = vector.shape_cast %9 : vector<1x128x128xf32> to vector<128x128xf32>
    %11 = arith.addf %8, %10 : vector<128x128xf32>
    %12 = vector.extract_strided_slice %6 {offsets = [2, 0, 0], sizes = [1, 128, 128], strides = [1, 1, 1]} : vector<6x128x128xf32> to vector<1x128x128xf32>
    %13 = vector.shape_cast %12 : vector<1x128x128xf32> to vector<128x128xf32>
    %14 = arith.subf %11, %13 : vector<128x128xf32>
    %15 = math.absf %14 : vector<128x128xf32>
    %cst = arith.constant dense<0.000000e+00> : vector<128xf32>
    %16 = vector.multi_reduction <add>, %15, %cst [1] : vector<128x128xf32> to vector<128xf32>
    %17 = vector.extract_strided_slice %6 {offsets = [3, 0, 0], sizes = [1, 128, 128], strides = [1, 1, 1]} : vector<6x128x128xf32> to vector<1x128x128xf32>
    %18 = vector.shape_cast %17 : vector<1x128x128xf32> to vector<128x128xf32>
    %19 = vector.extract_strided_slice %6 {offsets = [4, 0, 0], sizes = [1, 128, 128], strides = [1, 1, 1]} : vector<6x128x128xf32> to vector<1x128x128xf32>
    %20 = vector.shape_cast %19 : vector<1x128x128xf32> to vector<128x128xf32>
    %21 = arith.addf %18, %20 : vector<128x128xf32>
    %22 = vector.extract_strided_slice %6 {offsets = [5, 0, 0], sizes = [1, 128, 128], strides = [1, 1, 1]} : vector<6x128x128xf32> to vector<1x128x128xf32>
    %23 = vector.shape_cast %22 : vector<1x128x128xf32> to vector<128x128xf32>
    %24 = arith.subf %21, %23 : vector<128x128xf32>
    %25 = math.absf %24 : vector<128x128xf32>
    %cst_8 = arith.constant dense<0.000000e+00> : vector<128xf32>
    %26 = vector.multi_reduction <add>, %25, %cst_8 [1] : vector<128x128xf32> to vector<128xf32>
    %27 = arith.subf %16, %26 : vector<128xf32>
    %cst_9 = arith.constant 1.000000e+00 : f32
    %28 = vector.broadcast %cst_9 : f32 to vector<128xf32>
    %29 = arith.addf %27, %28 : vector<128xf32>
    %cst_10 = arith.constant 0.000000e+00 : f32
    %30 = vector.broadcast %cst_10 : f32 to vector<128xf32>
    %31 = arith.maximumf %29, %30 : vector<128xf32>
    %c0_11 = arith.constant 0 : index
    %c0_12 = arith.constant 0 : index
    %32 = vector.load %arg2[%c0_11, %c0_12] : memref<1x128xf32, #tpu.memory_space<vmem>>, vector<1x128xf32>
    %33 = vector.shape_cast %31 : vector<128xf32> to vector<1x128xf32>
    %34 = arith.mulf %32, %33 : vector<1x128xf32>
    %c0_13 = arith.constant 0 : index
    %c0_14 = arith.constant 0 : index
    %35 = vector.load %arg5[%c0_13, %c0_14] : memref<1x1xf32, #tpu.memory_space<vmem>>, vector<1x1xf32>
    %cst_15 = arith.constant dense<0.000000e+00> : vector<1xf32>
    %36 = vector.multi_reduction <add>, %34, %cst_15 [1] : vector<1x128xf32> to vector<1xf32>
    %37 = vector.shape_cast %36 : vector<1xf32> to vector<1x1xf32>
    %38 = arith.addf %35, %37 : vector<1x1xf32>
    %c0_16 = arith.constant 0 : index
    %c0_17 = arith.constant 0 : index
    %39 = vector.load %arg5[%c0_16, %c0_17] : memref<1x1xf32, #tpu.memory_space<vmem>>, vector<1x1xf32>
    tpu.vector_store %arg5[%c0_16, %c0_17], %38 {strides = array<i32>} : memref<1x1xf32, #tpu.memory_space<vmem>>, vector<1x1xf32>,
    %40 = vector.shape_cast %26 : vector<128xf32> to vector<1x128xf32>
    %c0_18 = arith.constant 0 : index
    %c0_19 = arith.constant 0 : index
    %41 = vector.load %arg6[%c0_18, %c0_19] : memref<1x128xf32, #tpu.memory_space<vmem>>, vector<1x128xf32>
    tpu.vector_store %arg6[%c0_18, %c0_19], %40 {strides = array<i32>} : memref<1x128xf32, #tpu.memory_space<vmem>>, vector<1x128xf32>,
    return
  }
  func.func @transform_0(%arg0: i32, %arg1: memref<6x128xi32, #tpu.memory_space<smem>>) -> (i32, i32) {
    %c0_i32 = arith.constant 0 : i32
    %c0_i32_0 = arith.constant 0 : i32
    return %c0_i32, %arg0 : i32, i32
  }
  func.func @transform_3(%arg0: i32, %arg1: memref<6x128xi32, #tpu.memory_space<smem>>) -> (i32, i32) {
    %c0_i32 = arith.constant 0 : i32
    %c0_i32_0 = arith.constant 0 : i32
    %c0_i32_1 = arith.constant 0 : i32
    return %c0_i32, %c0_i32_0 : i32, i32
  }
  func.func @transform_4(%arg0: i32, %arg1: memref<6x128xi32, #tpu.memory_space<smem>>) -> (i32, i32) {
    %c0_i32 = arith.constant 0 : i32
    %c0_i32_0 = arith.constant 0 : i32
    return %c0_i32, %arg0 : i32, i32
  }
}

</mosaic_0001>

<bundles_post_ra>
// kernel: tpu_custom_call.1
= control target key start
LH: loop header
LB: loop body
LE: loop exit
PB: predicated region body
PF: predicated region fallthrough
CT: control target
= control target key end

     0   :  { %s3083_s0 = inlined_call_operand.hbm [shape: s32[6,128], index: 0, kind: input, shape index: {}]   ;;  %s3084_s1 = inlined_call_operand.vmem [shape: f32[1,128], index: 1, kind: input, shape index: {}]   ;;  %s3085_s2 = inlined_call_operand.hbm [shape: f32[64,128], index: 2, kind: input, shape index: {}]   ;;  %s3086_s3 = inlined_call_operand.hbm [shape: f32[16,128], index: 3, kind: input, shape index: {}]   ;;  %s3087_s4 = inlined_call_operand.hbm [shape: f32[1,1], index: 4, kind: output, shape index: {0}]   ;;  %s3088_s5 = inlined_call_operand.hbm [shape: f32[1,128], index: 5, kind: output, shape index: {1}]  }
   0x1   :  { %s2165_s20 = scalar_lea.hbm %s3083_s0, 128 }
   0x2   :  { %p2166_p0 = scmp.ne.s32.totalorder %s3083_s0, %s2165_s20  ;;  %p2169_p1 = scmp.lt.u32.totalorder %s2165_s20, %s3083_s0 }
   0x4   :  { %p2171_p2 = pnand %p2169_p1, %p2166_p0 }
   0x6   :  { %2174 = shalt.err (!%p2171_p2)  }
   0x7   :  { %s2387_s25 = smov [#allocation5]  }
   0x8   :  { %12 = dma.hbm_to_smem %s3083_s0, 128, %s2387_s25, [#allocation4] }
   0x9   :  { %2371 = dma.done.wait [#allocation4], 128 }
   0xa   :  { %2372 = vsyncadd [#allocation4], 4294967168 }
   0xb   :  { %14 = sfence }
   0xc   :  { %15 = vsyncpa [#allocation7], 0 }
   0xd   :  { %16 = vsyncpa [#allocation9], 0  ;;  %vm23_vm0 = vcmask 0   ;;  %v2388_v0 = vmov 0.0   ;;  %s2437_s28 = smov 0  }
   0xe   :  { %24 = vst.msk [vmem:[#allocation6] sm:$0x1] %vm23_vm0, %v2388_v0 }
   0xf LB: > { %s33_s0 = sld [smem:[#allocation5 + %s2381_s28]]  ;;  %s48_s29 = sshra.s32 %s2381_s28, 7  ;;  %s2381_s28 = sphi %s2437_s28, %s31_s28  }
  0x10   : > { %s2445_s30 = scalar_lea.vmem [#allocation2], %s2381_s28  ;;  %s2448_s7 = sshll.u32 %s48_s29, 7 }
  0x11   : > { %s44_s6 = sshll.u32 %s2445_s30, 4  ;;  %s2132_s8 = sadd.s32 128, %s2448_s7  ;;  %s45_s6 = int_to_ptr.vmem [resolvable:$true] %s44_s6 }
  0x12   : > { %s2452_s9 = sand.u32 127, %s2381_s28  ;;  %s2092_s11 = scalar_lea.vmem %s2445_s30, 128 [#allocation2] }
  0x13   : > { %s54_s10 = sadd.s32 %s2132_s8, %s2452_s9  ;;  %s67_s14 = sshll.u32 %s2092_s11, 4  ;;  %s68_s14 = int_to_ptr.vmem [resolvable:$true] %s67_s14 }
  0x14   : > { %s2456_s12 = sld [smem:[#allocation5 + %s54_s10]]  ;;  %s2134_s18 = sadd.s32 256, %s2448_s7 }
  0x15   : > { %s2119_s13 = sshll.u32 %s33_s0, 4  ;;  %s2465_s22 = scalar_lea.hbm %s3085_s2, 1024 }
  0x16   : > { %s35_s17 = scalar_lea.hbm %s3085_s2, %s2119_s13 }
  0x17   : > { %s2175_s19 = scalar_lea.hbm %s35_s17, 16  ;;  %p2178_p4 = scmp.lt.u32.totalorder %s35_s17, %s3085_s2 }
  0x18   : > { %p2176_p3 = scmp.ne.s32.totalorder %s35_s17, %s2175_s19  ;;  %p2179_p5 = scmp.lt.u32.totalorder %s2465_s22, %s2175_s19 }
  0x19   : > { %p2181_p7 = scmp.lt.u32.totalorder %s2175_s19, %s35_s17 }
  0x1a   : > { %p2180_p6 = por %p2179_p5, %p2178_p4 }
  0x1c   : > { %p2182_p8 = por %p2181_p7, %p2180_p6 }
  0x1e   : > { %p2183_p9 = pnand %p2182_p8, %p2176_p3 }
  0x20   : > { %2186 = shalt.err (!%p2183_p9)  }
  0x21   : > { %s2187_s25 = scalar_lea.vmem %s45_s6, 16  ;;  %s2389_s26 = smov [#allocation2]  }
  0x22   : > { %p2188_p10 = scmp.ne.s32.totalorder %s45_s6, %s2187_s25  ;;  %s2189_s27 = sshll.u32 %s2389_s26, 4  ;;  %s2471_s27 = int_to_ptr.vmem [resolvable:$false] %s2189_s27 }
  0x23   : > { %s2474_s0 = scalar_lea.vmem %s2471_s27, 12288  ;;  %p2192_p11 = scmp.lt.s32.totalorder %s45_s6, %s2471_s27 }
  0x24   : > { %p2193_p12 = scmp.lt.s32.totalorder %s2474_s0, %s2187_s25 }
  0x26   : > { %p2194_p13 = por %p2193_p12, %p2192_p11 }
  0x28   : > { %p2195_p0 = pnand %p2194_p13, %p2188_p10 }
  0x2a   : > { %2198 = shalt.err (!%p2195_p0)  }
  0x2b   : > { %47 = dma.hbm_to_vmem [thread:$0]  %s35_s17, 16, %s45_s6, [#allocation3] }
  0x2c   : > { %s73_s29 = sadd.s32 %s2134_s18, %s2452_s9  ;;  %s2096_s8 = scalar_lea.vmem %s2445_s30, 256 [#allocation2] }
  0x2d   : > { %s2480_s10 = sld [smem:[#allocation5 + %s73_s29]]  ;;  %s2121_s11 = sshll.u32 %s2456_s12, 4 }
  0x2e   : > { %s86_s13 = sshll.u32 %s2096_s8, 4  ;;  %s57_s19 = scalar_lea.hbm %s3086_s3, %s2121_s11  ;;  %s87_s13 = int_to_ptr.vmem [resolvable:$true] %s86_s13 }
  0x2f   : > { %s2136_s20 = sadd.s32 384, %s2448_s7  ;;  %s2199_s21 = scalar_lea.hbm %s57_s19, 16 }
  0x30   : > { %p2200_p1 = scmp.ne.s32.totalorder %s57_s19, %s2199_s21  ;;  %s2201_s17 = scalar_lea.hbm %s3086_s3, 256 }
  0x31   : > { %p2202_p2 = scmp.lt.u32.totalorder %s57_s19, %s3086_s3  ;;  %p2203_p3 = scmp.lt.u32.totalorder %s2201_s17, %s2199_s21 }
  0x32   : > { %p2205_p5 = scmp.lt.u32.totalorder %s2199_s21, %s57_s19 }
  0x33   : > { %p2204_p4 = por %p2203_p3, %p2202_p2 }
  0x35   : > { %p2206_p6 = por %p2205_p5, %p2204_p4 }
  0x37   : > { %p2207_p7 = pnand %p2206_p6, %p2200_p1 }
  0x39   : > { %2210 = shalt.err (!%p2207_p7)  }
  0x3a   : > { %s2211_s12 = scalar_lea.vmem %s68_s14, 16  ;;  %p2216_p9 = scmp.lt.s32.totalorder %s68_s14, %s2471_s27 }
  0x3b   : > { %p2212_p8 = scmp.ne.s32.totalorder %s68_s14, %s2211_s12  ;;  %p2217_p10 = scmp.lt.s32.totalorder %s2474_s0, %s2211_s12 }
  0x3d   : > { %p2218_p11 = por %p2217_p10, %p2216_p9 }
  0x3f   : > { %p2219_p12 = pnand %p2218_p11, %p2212_p8 }
  0x41   : > { %2222 = shalt.err (!%p2219_p12)  }
  0x42   : > { %70 = dma.hbm_to_vmem [thread:$0]  %s57_s19, 16, %s68_s14, [#allocation3] }
  0x43   : > { %s92_s29 = sadd.s32 %s2136_s20, %s2452_s9  ;;  %s2100_s8 = scalar_lea.vmem %s2445_s30, 384 [#allocation2] }
  0x44   : > { %s2501_s11 = sld [smem:[#allocation5 + %s92_s29]]  ;;  %s2123_s15 = sshll.u32 %s2480_s10, 4 }
  0x45   : > { %s105_s16 = sshll.u32 %s2100_s8, 4  ;;  %s76_s6 = scalar_lea.hbm %s3085_s2, %s2123_s15  ;;  %s106_s16 = int_to_ptr.vmem [resolvable:$true] %s105_s16 }
  0x46   : > { %s2138_s24 = sadd.s32 512, %s2448_s7  ;;  %s2223_s25 = scalar_lea.hbm %s76_s6, 16 }
  0x47   : > { %p2224_p13 = scmp.ne.s32.totalorder %s76_s6, %s2223_s25  ;;  %p2226_p0 = scmp.lt.u32.totalorder %s76_s6, %s3085_s2 }
  0x48   : > { %p2227_p1 = scmp.lt.u32.totalorder %s2465_s22, %s2223_s25  ;;  %p2229_p3 = scmp.lt.u32.totalorder %s2223_s25, %s76_s6 }
  0x4a   : > { %p2228_p2 = por %p2227_p1, %p2226_p0 }
  0x4c   : > { %p2230_p4 = por %p2229_p3, %p2228_p2 }
  0x4e   : > { %p2231_p5 = pnand %p2230_p4, %p2224_p13 }
  0x50   : > { %2234 = shalt.err (!%p2231_p5)  }
  0x51   : > { %s2235_s20 = scalar_lea.vmem %s87_s13, 16  ;;  %p2240_p7 = scmp.lt.s32.totalorder %s87_s13, %s2471_s27 }
  0x52   : > { %p2236_p6 = scmp.ne.s32.totalorder %s87_s13, %s2235_s20  ;;  %p2241_p8 = scmp.lt.s32.totalorder %s2474_s0, %s2235_s20 }
  0x54   : > { %p2242_p9 = por %p2241_p8, %p2240_p7 }
  0x56   : > { %p2243_p10 = pnand %p2242_p9, %p2236_p6 }
  0x58   : > { %2246 = shalt.err (!%p2243_p10)  }
  0x59   : > { %89 = dma.hbm_to_vmem [thread:$0]  %s76_s6, 16, %s87_s13, [#allocation3] }
  0x5a   : > { %s111_s10 = sadd.s32 %s2138_s24, %s2452_s9  ;;  %s2104_s18 = scalar_lea.vmem %s2445_s30, 512 [#allocation2] }
  0x5b   : > { %s112_s26 = sld [smem:[#allocation5 + %s111_s10]]  ;;  %s2125_s12 = sshll.u32 %s2501_s11, 4 }
  0x5c   : > { %s124_s29 = sshll.u32 %s2104_s18, 4  ;;  %s95_s21 = scalar_lea.hbm %s3085_s2, %s2125_s12  ;;  %s125_s29 = int_to_ptr.vmem [resolvable:$true] %s124_s29 }
  0x5d   : > { %s2140_s23 = sadd.s32 640, %s2448_s7  ;;  %s2247_s25 = scalar_lea.hbm %s95_s21, 16 }
  0x5e   : > { %p2248_p11 = scmp.ne.s32.totalorder %s95_s21, %s2247_s25  ;;  %p2250_p12 = scmp.lt.u32.totalorder %s95_s21, %s3085_s2 }
  0x5f   : > { %p2251_p13 = scmp.lt.u32.totalorder %s2465_s22, %s2247_s25  ;;  %p2253_p1 = scmp.lt.u32.totalorder %s2247_s25, %s95_s21 }
  0x61   : > { %p2252_p0 = por %p2251_p13, %p2250_p12 }
  0x63   : > { %p2254_p2 = por %p2253_p1, %p2252_p0 }
  0x65   : > { %p2255_p3 = pnand %p2254_p2, %p2248_p11 }
  0x67   : > { %2258 = shalt.err (!%p2255_p3)  }
  0x68   : > { %s2259_s6 = scalar_lea.vmem %s106_s16, 16  ;;  %p2264_p5 = scmp.lt.s32.totalorder %s106_s16, %s2471_s27 }
  0x69   : > { %p2260_p4 = scmp.ne.s32.totalorder %s106_s16, %s2259_s6  ;;  %p2265_p6 = scmp.lt.s32.totalorder %s2474_s0, %s2259_s6 }
  0x6b   : > { %p2266_p7 = por %p2265_p6, %p2264_p5 }
  0x6d   : > { %p2267_p8 = pnand %p2266_p7, %p2260_p4 }
  0x6f   : > { %2270 = shalt.err (!%p2267_p8)  }
  0x70   : > { %108 = dma.hbm_to_vmem [thread:$0]  %s95_s21, 16, %s106_s16, [#allocation3] }
  0x71   : > { %s130_s7 = sadd.s32 %s2140_s23, %s2452_s9  ;;  %s2108_s11 = scalar_lea.vmem %s2445_s30, 640 [#allocation2] }
  0x72   : > { %s131_s24 = sld [smem:[#allocation5 + %s130_s7]]  ;;  %s2127_s19 = sshll.u32 %s112_s26, 4 }
  0x73   : > { %s114_s18 = scalar_lea.hbm %s3086_s3, %s2127_s19  ;;  %s143_s12 = sshll.u32 %s2108_s11, 4  ;;  %s144_s12 = int_to_ptr.vmem [resolvable:$true] %s143_s12 }
  0x74   : > { %s2271_s8 = scalar_lea.hbm %s114_s18, 16  ;;  %p2274_p10 = scmp.lt.u32.totalorder %s114_s18, %s3086_s3 }
  0x75   : > { %p2272_p9 = scmp.ne.s32.totalorder %s114_s18, %s2271_s8  ;;  %p2275_p11 = scmp.lt.u32.totalorder %s2201_s17, %s2271_s8 }
  0x76   : > { %p2277_p13 = scmp.lt.u32.totalorder %s2271_s8, %s114_s18 }
  0x77   : > { %p2276_p12 = por %p2275_p11, %p2274_p10 }
  0x79   : > { %p2278_p0 = por %p2277_p13, %p2276_p12 }
  0x7b   : > { %p2279_p1 = pnand %p2278_p0, %p2272_p9 }
  0x7d   : > { %2282 = shalt.err (!%p2279_p1)  }
  0x7e   : > { %s2283_s30 = scalar_lea.vmem %s125_s29, 16  ;;  %p2288_p3 = scmp.lt.s32.totalorder %s125_s29, %s2471_s27 }
  0x7f   : > { %p2284_p2 = scmp.ne.s32.totalorder %s125_s29, %s2283_s30  ;;  %p2289_p4 = scmp.lt.s32.totalorder %s2474_s0, %s2283_s30 }
  0x81   : > { %p2290_p5 = por %p2289_p4, %p2288_p3 }
  0x83   : > { %p2291_p6 = pnand %p2290_p5, %p2284_p2 }
  0x85   : > { %2294 = shalt.err (!%p2291_p6)  }
  0x86   : > { %127 = dma.hbm_to_vmem [thread:$0]  %s114_s18, 16, %s125_s29, [#allocation3] }
  0x87   : > { %s2129_s9 = sshll.u32 %s131_s24, 4 }
  0x88   : > { %s133_s21 = scalar_lea.hbm %s3085_s2, %s2129_s9 }
  0x89   : > { %s2295_s23 = scalar_lea.hbm %s133_s21, 16  ;;  %p2298_p8 = scmp.lt.u32.totalorder %s133_s21, %s3085_s2 }
  0x8a   : > { %p2296_p7 = scmp.ne.s32.totalorder %s133_s21, %s2295_s23  ;;  %p2299_p9 = scmp.lt.u32.totalorder %s2465_s22, %s2295_s23 }
  0x8b   : > { %p2301_p11 = scmp.lt.u32.totalorder %s2295_s23, %s133_s21 }
  0x8c   : > { %p2300_p10 = por %p2299_p9, %p2298_p8 }
  0x8e   : > { %p2302_p12 = por %p2301_p11, %p2300_p10 }
  0x90   : > { %p2303_p13 = pnand %p2302_p12, %p2296_p7 }
  0x92   : > { %2306 = shalt.err (!%p2303_p13)  }
  0x93   : > { %s2307_s29 = scalar_lea.vmem %s144_s12, 16  ;;  %p2312_p1 = scmp.lt.s32.totalorder %s144_s12, %s2471_s27 }
  0x94   : > { %p2308_p0 = scmp.ne.s32.totalorder %s144_s12, %s2307_s29  ;;  %p2313_p2 = scmp.lt.s32.totalorder %s2474_s0, %s2307_s29 }
  0x96   : > { %p2314_p3 = por %p2313_p2, %p2312_p1 }
  0x98   : > { %p2315_p4 = pnand %p2314_p3, %p2308_p0 }
  0x9a   : > { %2318 = shalt.err (!%p2315_p4)  }
  0x9b   : > { %146 = dma.hbm_to_vmem [thread:$0]  %s133_s21, 16, %s144_s12, [#allocation3] }
  0x9c   : > { %s31_s28 = sadd.s32 1, %s2381_s28  }
  0x9d   : > { %p28_p5 = scmp.ge.s32.totalorder %s31_s28, 128  }
  0x9e   :  { %s2383_s22 = smov (%p28_p5), 0  }
  0x9f   :  { %30 = sbr.rel (!%p28_p5) target bundleno = 15 (0xf), region = 86 }
  0xa6 LB: > { %2373 = dma.done.wait [#allocation3], 16  ;;  %s2385_s22 = sphi %s2383_s22, %s152_s22  }
  0xa7   : > { %2374 = vsyncadd [#allocation3], 4294967280  ;;  %s152_s22 = sadd.s32 1, %s2385_s22  }
  0xa8   : > { %p149_p6 = scmp.ge.s32.totalorder %s152_s22, 768  }
  0xa9   :  { %v203_v1 = vld [vmem:[#allocation2 + $0x180] sm:$0xff] (%p149_p6)  ;;  %v204_v9 = vld [vmem:[#allocation2 + $0x188] sm:$0xff] (%p149_p6)  ;;  %v205_v19 = vld [vmem:[#allocation2 + $0x190] sm:$0xff] (%p149_p6)  ;;  %vm1831_vm1 = vcmask (%p149_p6), 130112   ;;  %vm1838_vm2 = vcmask (%p149_p6), 195712   ;;  %vm1845_vm3 = vcmask (%p149_p6), 261312  }
  0xaa   :  { %151 = sbr.rel (!%p149_p6) target bundleno = 166 (0xa6), region = 97  ;;  %v219_v2 = vld [vmem:[#allocation2 + $0x200] sm:$0xff] (%p149_p6)  ;;  %v220_v10 = vld [vmem:[#allocation2 + $0x208] sm:$0xff] (%p149_p6)  ;;  %v221_v20 = vld [vmem:[#allocation2 + $0x210] sm:$0xff] (%p149_p6)  ;;  %vm1852_vm4 = vcmask (%p149_p6), 326912   ;;  %vm1859_vm5 = vcmask (%p149_p6), 392512  }
  0xab   :  { %v235_v3 = vld [vmem:[#allocation2 + $0x280] sm:$0xff] (%p149_p6)  ;;  %v331_v4 = vadd.f32 (%p149_p6), %v219_v2, %v203_v1  ;;  %v236_v11 = vld [vmem:[#allocation2 + $0x288] sm:$0xff] (%p149_p6)  ;;  %v332_v13 = vadd.f32 (%p149_p6), %v220_v10, %v204_v9  ;;  %v237_v21 = vld [vmem:[#allocation2 + $0x290] sm:$0xff] (%p149_p6)  ;;  %v333_v24 = vadd.f32 (%p149_p6), %v221_v20, %v205_v19  ;;  %vm1866_vm6 = vcmask (%p149_p6), 458112   ;;  %s2392_s28 = smov (%p149_p6), [#allocation8]  }
  0xac   :  { %v155_v5 = vld [vmem:[#allocation2] sm:$0xff] (%p149_p6)  ;;  %v156_v14 = vld [vmem:[#allocation2 + $0x8] sm:$0xff] (%p149_p6)  ;;  %v157_v25 = vld [vmem:[#allocation2 + $0x10] sm:$0xff] (%p149_p6)  ;;  %vm1873_vm7 = vcmask (%p149_p6), 523712   ;;  %vm1880_vm8 = vcmask (%p149_p6), 589312   ;;  %vm1887_vm9 = vcmask (%p149_p6), 654912  }
  0xad   :  { %v171_v6 = vld [vmem:[#allocation2 + $0x80] sm:$0xff] (%p149_p6)  ;;  %v347_v12 = vsub.f32 (%p149_p6), %v331_v4, %v235_v3  ;;  %v172_v15 = vld [vmem:[#allocation2 + $0x88] sm:$0xff] (%p149_p6)  ;;  %v348_v23 = vsub.f32 (%p149_p6), %v332_v13, %v236_v11  ;;  %v173_v26 = vld [vmem:[#allocation2 + $0x90] sm:$0xff] (%p149_p6)  ;;  %v349_v34 = vsub.f32 (%p149_p6), %v333_v24, %v237_v21  ;;  %vm1894_vm10 = vcmask (%p149_p6), 720512   ;;  %s2068_s27 = sshll.u32 (%p149_p6), %s2392_s28, 4  ;;  %s2069_s27 = int_to_ptr.vmem [resolvable:$true] %s2068_s27 }
  0xae   :  { %v187_v7 = vld [vmem:[#allocation2 + $0x100] sm:$0xff] (%p149_p6)  ;;  %v251_v8 = vadd.f32 (%p149_p6), %v171_v6, %v155_v5  ;;  %v188_v16 = vld [vmem:[#allocation2 + $0x108] sm:$0xff] (%p149_p6)  ;;  %v252_v18 = vadd.f32 (%p149_p6), %v172_v15, %v156_v14  ;;  %v189_v27 = vld [vmem:[#allocation2 + $0x110] sm:$0xff] (%p149_p6)  ;;  %v253_v30 = vadd.f32 (%p149_p6), %v173_v26, %v157_v25  ;;  %vm1901_vm11 = vcmask (%p149_p6), 786112   ;;  %s2319_s0 = scalar_lea.vmem (%p149_p6), %s2069_s27, 16  ;;  %s2323_s7 = scalar_lea.vmem (%p149_p6), %s2069_s27, 32 }
  0xaf   :  { %v363_v22 = vand.u32 (%p149_p6), 2147483647, %v347_v12  ;;  %v206_v31 = vld [vmem:[#allocation2 + $0x198] sm:$0xff] (%p149_p6)  ;;  %v364_v33 = vand.u32 (%p149_p6), 2147483647, %v348_v23  ;;  %v207_v42 = vld [vmem:[#allocation2 + $0x1a0] sm:$0xff] (%p149_p6)  ;;  %p2320_p7 = scmp.ne.s32.totalorder (%p149_p6), %s2069_s27, %s2319_s0  ;;  %p2324_p8 = scmp.lt.s32.totalorder (%p149_p6), %s2069_s27, %s2069_s27 }
  0xb0   :  { %v267_v17 = vsub.f32 (%p149_p6), %v251_v8, %v187_v7  ;;  %v268_v29 = vsub.f32 (%p149_p6), %v252_v18, %v188_v16  ;;  %v222_v32 = vld [vmem:[#allocation2 + $0x218] sm:$0xff] (%p149_p6)  ;;  %v269_v39 = vsub.f32 (%p149_p6), %v253_v30, %v189_v27  ;;  %v223_v43 = vld [vmem:[#allocation2 + $0x220] sm:$0xff] (%p149_p6)  ;;  %v365_v47 = vand.u32 (%p149_p6), 2147483647, %v349_v34  ;;  %v208_v54 = vld [vmem:[#allocation2 + $0x1a8] sm:$0xff] (%p149_p6)  ;;  %p2325_p9 = scmp.lt.s32.totalorder (%p149_p6), %s2323_s7, %s2319_s0 }
  0xb1   :  { %379 = vadd.xlane.f32.xlu1 %v363_v22  ;;  %v334_v35 = vadd.f32 %v222_v32, %v206_v31  ;;  %v158_v36 = vld [vmem:[#allocation2 + $0x18] sm:$0xff]  ;;  %v159_v45 = vld [vmem:[#allocation2 + $0x20] sm:$0xff]  ;;  %v335_v49 = vadd.f32 %v223_v43, %v207_v42  ;;  %v224_v55 = vld [vmem:[#allocation2 + $0x228] sm:$0xff]  ;;  %vm1908_vm12 = vcmask 851712   ;;  %vm1915_vm13 = vcmask 917312  }
  0xb2   :  { %v283_v28 = vand.u32 2147483647, %v267_v17  ;;  %v174_v37 = vld [vmem:[#allocation2 + $0x98] sm:$0xff]  ;;  %v284_v38 = vand.u32 2147483647, %v268_v29  ;;  %v175_v46 = vld [vmem:[#allocation2 + $0xa0] sm:$0xff]  ;;  %v336_v61 = vadd.f32 %v224_v55, %v208_v54  ;;  %p2326_p10 = por %p2325_p9, %p2324_p8 }
  0xb3   :  { %v238_v40 = vld [vmem:[#allocation2 + $0x298] sm:$0xff]  ;;  %v254_v41 = vadd.f32 %v174_v37, %v158_v36  ;;  %v285_v50 = vand.u32 2147483647, %v269_v39  ;;  %v239_v52 = vld [vmem:[#allocation2 + $0x2a0] sm:$0xff]  ;;  %v255_v53 = vadd.f32 %v175_v46, %v159_v45  ;;  %v160_v57 = vld [vmem:[#allocation2 + $0x28] sm:$0xff]  ;;  %vm1922_vm14 = vcmask 982912  }
  0xb4   :  { %299 = vadd.xlane.f32.xlu0 %v283_v28  ;;  %v190_v44 = vld [vmem:[#allocation2 + $0x118] sm:$0xff]  ;;  %v350_v48 = vsub.f32 %v334_v35, %v238_v40  ;;  %v191_v56 = vld [vmem:[#allocation2 + $0x120] sm:$0xff]  ;;  %v176_v58 = vld [vmem:[#allocation2 + $0xa8] sm:$0xff]  ;;  %v351_v60 = vsub.f32 %v335_v49, %v239_v52  ;;  %vm1929_vm15 = vcmask 1048512   ;;  %p2327_p11 = pnand %p2326_p10, %p2320_p7 }
  0xb5   :  { %381 = vadd.xlane.f32.xlu1 %v364_v33  ;;  %v270_v51 = vsub.f32 %v254_v41, %v190_v44  ;;  %v271_v63 = vsub.f32 %v255_v53, %v191_v56  ;;  %v240_v0 = vld [vmem:[#allocation2 + $0x2a8] sm:$0xff]  ;;  %v256_v1 = vadd.f32 %v176_v58, %v160_v57  ;;  %v209_v2 = vld [vmem:[#allocation2 + $0x1b0] sm:$0xff]  ;;  %v210_v14 = vld [vmem:[#allocation2 + $0x1b8] sm:$0xff] }
  0xb6   :  { %v366_v59 = vand.u32 2147483647, %v350_v48  ;;  %v225_v3 = vld [vmem:[#allocation2 + $0x230] sm:$0xff]  ;;  %v192_v4 = vld [vmem:[#allocation2 + $0x128] sm:$0xff]  ;;  %v367_v7 = vand.u32 2147483647, %v351_v60  ;;  %v352_v8 = vsub.f32 %v336_v61, %v240_v0 }
  0xb7   :  { %v286_v62 = vand.u32 2147483647, %v270_v51  ;;  %v161_v5 = vld [vmem:[#allocation2 + $0x30] sm:$0xff]  ;;  %v337_v9 = vadd.f32 %v225_v3, %v209_v2  ;;  %v287_v10 = vand.u32 2147483647, %v271_v63  ;;  %v272_v11 = vsub.f32 %v256_v1, %v192_v4  ;;  %v226_v15 = vld [vmem:[#allocation2 + $0x238] sm:$0xff] }
  0xb8   :  { %301 = vadd.xlane.f32.xlu0 %v284_v38  ;;  %v177_v6 = vld [vmem:[#allocation2 + $0xb0] sm:$0xff]  ;;  %v162_v17 = vld [vmem:[#allocation2 + $0x38] sm:$0xff]  ;;  %v368_v19 = vand.u32 2147483647, %v352_v8  ;;  %v338_v21 = vadd.f32 %v226_v15, %v210_v14  ;;  %v211_v26 = vld [vmem:[#allocation2 + $0x1c0] sm:$0xff] }
  0xb9   :  { %383 = vadd.xlane.f32.xlu1 %v365_v47  ;;  %v241_v12 = vld [vmem:[#allocation2 + $0x2b0] sm:$0xff]  ;;  %v257_v13 = vadd.f32 %v177_v6, %v161_v5  ;;  %v178_v18 = vld [vmem:[#allocation2 + $0xb8] sm:$0xff]  ;;  %v288_v22 = vand.u32 2147483647, %v272_v11  ;;  %v227_v27 = vld [vmem:[#allocation2 + $0x240] sm:$0xff]  ;;  %v2390_v6 = vmov 0  }
  0xba   :  { %v193_v16 = vld [vmem:[#allocation2 + $0x130] sm:$0xff]  ;;  %v353_v20 = vsub.f32 %v337_v9, %v241_v12  ;;  %v242_v24 = vld [vmem:[#allocation2 + $0x2b8] sm:$0xff]  ;;  %v258_v25 = vadd.f32 %v178_v18, %v162_v17  ;;  %v163_v29 = vld [vmem:[#allocation2 + $0x40] sm:$0xff]  ;;  %v339_v33 = vadd.f32 %v227_v27, %v211_v26  ;;  %2163 = vset.pattern.permute.xlu0 %v2390_v6  ;;  %2164 = vset.pattern.permute.xlu1 %v2390_v6 }
  0xbb   :  { %v273_v23 = vsub.f32 %v257_v13, %v193_v16  ;;  %v194_v28 = vld [vmem:[#allocation2 + $0x138] sm:$0xff]  ;;  %v179_v30 = vld [vmem:[#allocation2 + $0xc0] sm:$0xff]  ;;  %v354_v32 = vsub.f32 %v338_v21, %v242_v24  ;;  %v212_v38 = vld [vmem:[#allocation2 + $0x1c8] sm:$0xff] }
  0xbc   :  { %303 = vadd.xlane.f32.xlu0 %v285_v50  ;;  %v369_v31 = vand.u32 2147483647, %v353_v20  ;;  %v274_v35 = vsub.f32 %v258_v25, %v194_v28  ;;  %v243_v36 = vld [vmem:[#allocation2 + $0x2c0] sm:$0xff]  ;;  %v259_v37 = vadd.f32 %v179_v30, %v163_v29  ;;  %v228_v39 = vld [vmem:[#allocation2 + $0x248] sm:$0xff]  ;;  %v213_v50 = vld [vmem:[#allocation2 + $0x1d0] sm:$0xff] }
  0xbd   :  { %385 = vadd.xlane.f32.xlu1 %v366_v59  ;;  %v289_v34 = vand.u32 2147483647, %v273_v23  ;;  %v195_v40 = vld [vmem:[#allocation2 + $0x140] sm:$0xff]  ;;  %v164_v41 = vld [vmem:[#allocation2 + $0x48] sm:$0xff]  ;;  %v370_v43 = vand.u32 2147483647, %v354_v32  ;;  %v355_v44 = vsub.f32 %v339_v33, %v243_v36  ;;  %v340_v45 = vadd.f32 %v228_v39, %v212_v38 }
  0xbe   :  { %v180_v42 = vld [vmem:[#allocation2 + $0xc8] sm:$0xff]  ;;  %v290_v46 = vand.u32 2147483647, %v274_v35  ;;  %v275_v47 = vsub.f32 %v259_v37, %v195_v40  ;;  %v229_v51 = vld [vmem:[#allocation2 + $0x250] sm:$0xff]  ;;  %v230_v63 = vld [vmem:[#allocation2 + $0x258] sm:$0xff] }
  0xbf   :  { %v244_v48 = vld [vmem:[#allocation2 + $0x2c8] sm:$0xff]  ;;  %v260_v49 = vadd.f32 %v180_v42, %v164_v41  ;;  %v165_v53 = vld [vmem:[#allocation2 + $0x50] sm:$0xff]  ;;  %v371_v55 = vand.u32 2147483647, %v355_v44  ;;  %v341_v57 = vadd.f32 %v229_v51, %v213_v50  ;;  %v166_v1 = vld [vmem:[#allocation2 + $0x58] sm:$0xff] }
  0xc0   :  { %305 = vadd.xlane.f32.xlu0 %v286_v62  ;;  %v196_v52 = vld [vmem:[#allocation2 + $0x148] sm:$0xff]  ;;  %v181_v54 = vld [vmem:[#allocation2 + $0xd0] sm:$0xff]  ;;  %v356_v56 = vsub.f32 %v340_v45, %v244_v48  ;;  %v291_v58 = vand.u32 2147483647, %v275_v47  ;;  %v214_v62 = vld [vmem:[#allocation2 + $0x1d8] sm:$0xff] }
  0xc1   :  { %387 = vadd.xlane.f32.xlu1 %v367_v7  ;;  %v276_v59 = vsub.f32 %v260_v49, %v196_v52  ;;  %v245_v60 = vld [vmem:[#allocation2 + $0x2d0] sm:$0xff]  ;;  %v261_v61 = vadd.f32 %v181_v54, %v165_v53  ;;  %v182_v2 = vld [vmem:[#allocation2 + $0xd8] sm:$0xff]  ;;  %v342_v5 = vadd.f32 %v230_v63, %v214_v62  ;;  %v215_v11 = vld [vmem:[#allocation2 + $0x1e0] sm:$0xff] }
  0xc2   :  { %v197_v0 = vld [vmem:[#allocation2 + $0x150] sm:$0xff]  ;;  %v372_v3 = vand.u32 2147483647, %v356_v56  ;;  %v357_v4 = vsub.f32 %v341_v57, %v245_v60  ;;  %v246_v9 = vld [vmem:[#allocation2 + $0x2d8] sm:$0xff]  ;;  %v231_v12 = vld [vmem:[#allocation2 + $0x260] sm:$0xff] }
  0xc3   :  { %v292_v7 = vand.u32 2147483647, %v276_v59  ;;  %v277_v8 = vsub.f32 %v261_v61, %v197_v0  ;;  %v198_v13 = vld [vmem:[#allocation2 + $0x158] sm:$0xff]  ;;  %v167_v14 = vld [vmem:[#allocation2 + $0x60] sm:$0xff]  ;;  %v358_v17 = vsub.f32 %v342_v5, %v246_v9  ;;  %v343_v18 = vadd.f32 %v231_v12, %v215_v11  ;;  %v216_v23 = vld [vmem:[#allocation2 + $0x1e8] sm:$0xff] }
  0xc4   :  { %307 = vadd.xlane.f32.xlu0 %v287_v10  ;;  %v262_v10 = vadd.f32 %v182_v2, %v166_v1  ;;  %v183_v15 = vld [vmem:[#allocation2 + $0xe0] sm:$0xff]  ;;  %v373_v16 = vand.u32 2147483647, %v357_v4  ;;  %v232_v24 = vld [vmem:[#allocation2 + $0x268] sm:$0xff]  ;;  %v217_v35 = vld [vmem:[#allocation2 + $0x1f0] sm:$0xff]  ;;  %v476_v2 = vlaneseq }
  0xc5   :  { %389 = vadd.xlane.f32.xlu1 %v368_v19  ;;  %v293_v19 = vand.u32 2147483647, %v277_v8  ;;  %v247_v21 = vld [vmem:[#allocation2 + $0x2e0] sm:$0xff]  ;;  %v168_v26 = vld [vmem:[#allocation2 + $0x68] sm:$0xff]  ;;  %v374_v28 = vand.u32 2147483647, %v358_v17  ;;  %v344_v30 = vadd.f32 %v232_v24, %v216_v23 }
  0xc6   :  { %v278_v20 = vsub.f32 %v262_v10, %v198_v13  ;;  %v199_v25 = vld [vmem:[#allocation2 + $0x160] sm:$0xff]  ;;  %v184_v27 = vld [vmem:[#allocation2 + $0xe8] sm:$0xff]  ;;  %v359_v29 = vsub.f32 %v343_v18, %v247_v21  ;;  %v233_v36 = vld [vmem:[#allocation2 + $0x270] sm:$0xff]  ;;  %v477_v4 = vshrl.u32 %v476_v2, 7  ;;  %v2391_v8 = vmov 1966171168  }
  0xc7   :  { %v248_v33 = vld [vmem:[#allocation2 + $0x2e8] sm:$0xff]  ;;  %v169_v38 = vld [vmem:[#allocation2 + $0x70] sm:$0xff]  ;;  %v345_v42 = vadd.f32 %v233_v36, %v217_v35  ;;  %v218_v47 = vld [vmem:[#allocation2 + $0x1f8] sm:$0xff]  ;;  %v993_v9 = vunpack.c.l.s4 %v2391_v8 }
  0xc8   :  { %309 = vadd.xlane.f32.xlu0 %v288_v22  ;;  %v263_v22 = vadd.f32 %v183_v15, %v167_v14  ;;  %v200_v37 = vld [vmem:[#allocation2 + $0x168] sm:$0xff]  ;;  %v185_v39 = vld [vmem:[#allocation2 + $0xf0] sm:$0xff]  ;;  %v375_v40 = vand.u32 2147483647, %v359_v29  ;;  %v360_v41 = vsub.f32 %v344_v30, %v248_v33  ;;  %v234_v48 = vld [vmem:[#allocation2 + $0x278] sm:$0xff]  ;;  %v2559_v14 = vsub.s32 0, %v477_v4 }
  0xc9   :  { %391 = vadd.xlane.f32.xlu1 %v369_v31  ;;  %v294_v31 = vand.u32 2147483647, %v278_v20  ;;  %v249_v45 = vld [vmem:[#allocation2 + $0x2f0] sm:$0xff]  ;;  %v170_v50 = vld [vmem:[#allocation2 + $0x78] sm:$0xff]  ;;  %v346_v54 = vadd.f32 %v234_v48, %v218_v47  ;;  %v2565_v17 = vsub.s32 2, %v477_v4  ;;  %v994_v18 = vunpack.c.0.s8 %v993_v9 }
  0xca   :  { %v279_v32 = vsub.f32 %v263_v22, %v199_v25  ;;  %v201_v49 = vld [vmem:[#allocation2 + $0x170] sm:$0xff]  ;;  %v186_v51 = vld [vmem:[#allocation2 + $0xf8] sm:$0xff]  ;;  %v376_v52 = vand.u32 2147483647, %v360_v41  ;;  %v361_v53 = vsub.f32 %v345_v42, %v249_v45  ;;  %v2569_v20 = vsub.s32 4, %v477_v4 }
  0xcb   :  { %v250_v57 = vld [vmem:[#allocation2 + $0x2f8] sm:$0xff]  ;;  %v2571_v21 = vsub.s32 5, %v477_v4  ;;  %v2575_v29 = vsub.s32 6, %v477_v4  ;;  %v2577_v30 = vsub.s32 7, %v477_v4 }
  0xcc   :  { %311 = vadd.xlane.f32.xlu0 %v289_v34  ;;  %v264_v34 = vadd.f32 %v184_v27, %v168_v26  ;;  %v202_v59 = vld [vmem:[#allocation2 + $0x178] sm:$0xff]  ;;  %v377_v60 = vand.u32 2147483647, %v361_v53  ;;  %v362_v61 = vsub.f32 %v346_v54, %v250_v57 }
  0xcd   :  { %393 = vadd.xlane.f32.xlu1 %v370_v43  ;;  %v295_v43 = vand.u32 2147483647, %v279_v32 }
  0xce   :  { %v280_v44 = vsub.f32 %v264_v34, %v200_v37  ;;  %v378_v0 = vand.u32 2147483647, %v362_v61  ;;  %v2579_v34 = vsub.s32 %v994_v18, %v477_v4 }
  0xd0   :  { %313 = vadd.xlane.f32.xlu0 %v290_v46  ;;  %v265_v46 = vadd.f32 %v185_v39, %v169_v38 }
  0xd1   :  { %395 = vadd.xlane.f32.xlu1 %v371_v55  ;;  %v296_v55 = vand.u32 2147483647, %v280_v44 }
  0xd2   :  { %v281_v56 = vsub.f32 %v265_v46, %v201_v49 }
  0xd4   :  { %315 = vadd.xlane.f32.xlu0 %v291_v58  ;;  %v266_v58 = vadd.f32 %v186_v51, %v170_v50  ;;  %v297_v62 = vand.u32 2147483647, %v281_v56 }
  0xd5   :  { %397 = vadd.xlane.f32.xlu1 %v372_v3  ;;  %v1821_v3 = vand.u32 127, %v476_v2 }
  0xd6   :  { %v282_v63 = vsub.f32 %v266_v58, %v202_v59 }
  0xd7   :  { %v1826_v5 = vadd.s32 4294967288, %v1821_v3  ;;  %v1833_v6 = vadd.s32 4294967280, %v1821_v3  ;;  %v2553_v10 = vsub.s32 %v1821_v3, %v477_v4  ;;  %v1847_v11 = vadd.s32 4294967264, %v1821_v3 }
  0xd8   :  { %317 = vadd.xlane.f32.xlu0 %v292_v7  ;;  %v298_v1 = vand.u32 2147483647, %v282_v63  ;;  %v1840_v7 = vadd.s32 4294967272, %v1821_v3  ;;  %v1854_v22 = vadd.s32 4294967256, %v1821_v3  ;;  %v1861_v25 = vadd.s32 4294967248, %v1821_v3 }
  0xd9   :  { %399 = vadd.xlane.f32.xlu1 %v373_v16  ;;  %v2555_v12 = vsub.s32 %v1826_v5, %v477_v4  ;;  %v2557_v13 = vsub.s32 %v1833_v6, %v477_v4  ;;  %v2563_v16 = vsub.s32 1, %v477_v4  ;;  %v2573_v24 = vsub.s32 %v1847_v11, %v477_v4 }
  0xda   :  { %v2561_v15 = vsub.s32 %v1840_v7, %v477_v4  ;;  %v1868_v26 = vadd.s32 4294967240, %v1821_v3  ;;  %v1875_v27 = vadd.s32 4294967232, %v1821_v3  ;;  %v1889_v32 = vadd.s32 4294967216, %v1821_v3 }
  0xdb   :  { %v1896_v35 = vadd.s32 4294967208, %v1821_v3  ;;  %v1903_v36 = vadd.s32 4294967200, %v1821_v3  ;;  %v2581_v37 = vsub.s32 %v1854_v22, %v477_v4  ;;  %v1910_v38 = vadd.s32 4294967192, %v1821_v3 }
  0xdc   :  { %319 = vadd.xlane.f32.xlu0 %v293_v19  ;;  %v2567_v19 = vsub.s32 3, %v477_v4  ;;  %v1917_v39 = vadd.s32 4294967184, %v1821_v3  ;;  %v2585_v44 = vsub.s32 %v1868_v26, %v477_v4  ;;  %v2587_v45 = vsub.s32 %v1875_v27, %v477_v4 }
  0xdd   :  { %401 = vadd.xlane.f32.xlu1 %v374_v28  ;;  %v2593_v50 = vsub.s32 %v1889_v32, %v477_v4  ;;  %v2595_v53 = vsub.s32 %v1896_v35, %v477_v4  ;;  %v2597_v54 = vsub.s32 %v1903_v36, %v477_v4  ;;  %v2600_v56 = vsub.s32 %v1910_v38, %v477_v4 }
  0xde   :  { %v2602_v57 = vsub.s32 %v1917_v39, %v477_v4 }
  0xe0   :  { %321 = vadd.xlane.f32.xlu0 %v294_v31  ;;  %v1882_v31 = vadd.s32 4294967224, %v1821_v3 }
  0xe1   :  { %403 = vadd.xlane.f32.xlu1 %v375_v40  ;;  %v1924_v40 = vadd.s32 4294967176, %v1821_v3 }
  0xe2   :  { %v2591_v49 = vsub.s32 %v1882_v31, %v477_v4 }
  0xe3   :  { %v2604_v58 = vsub.s32 %v1924_v40, %v477_v4 }
  0xe4   :  { %323 = vadd.xlane.f32.xlu0 %v295_v43  ;;  %v2583_v43 = vsub.s32 %v1861_v25, %v477_v4 }
  0xe5   :  { %405 = vadd.xlane.f32.xlu1 %v376_v52 }
  0xe8   :  { %325 = vadd.xlane.f32.xlu0 %v296_v55 }
  0xe9   :  { %407 = vadd.xlane.f32.xlu1 %v377_v60 }
  0xec   :  { %327 = vadd.xlane.f32.xlu0 %v297_v62 }
  0xed   :  { %409 = vadd.xlane.f32.xlu1 %v378_v0 }
  0xf0   :  { %329 = vadd.xlane.f32.xlu0 %v298_v1 }
 0x13e   :  { %v380_v23 = vpop.xlane.xlu1 %379 }
 0x13f   :  { %v1974_v46 = vrot.slane %v380_v23, %v2553_v10 }
 0x141   :  { %v300_v28 = vpop.xlane.xlu0 %299 }
 0x142   :  { %v411_v33 = vsub.f32 %v300_v28, %v380_v23  ;;  %v382_v42 = vpop.xlane.xlu1 %381 }
 0x143   :  { %v1978_v47 = vrot.slane %v382_v42, %v2555_v12 }
 0x144   :  { %v427_v41 = vadd.f32 1.0, %v411_v33 }
 0x145   :  { %v302_v48 = vpop.xlane.xlu0 %301  ;;  %v1979_v55 = vsel %vm1831_vm1, %v1978_v47, %v1974_v46 }
 0x146   :  { %v443_v51 = vmax.f32 %v427_v41, 0.0  ;;  %v412_v52 = vsub.f32 %v302_v48, %v382_v42  ;;  %v384_v60 = vpop.xlane.xlu1 %383 }
 0x147   :  { %v1983_v0 = vrot.slane %v384_v60, %v2557_v13 }
 0x148   :  { %v428_v59 = vadd.f32 1.0, %v412_v52  ;;  %v479_v61 = vrot.slane %v443_v51, %v2559_v14  ;;  %v483_v62 = vrot.slane %v443_v51, %v2563_v16  ;;  %v487_v63 = vrot.slane %v443_v51, %v2565_v17 }
 0x149   :  { %v304_v1 = vpop.xlane.xlu0 %303  ;;  %v491_v2 = vrot.slane %v443_v51, %v2567_v19  ;;  %v495_v3 = vrot.slane %v443_v51, %v2569_v20  ;;  %v499_v5 = vrot.slane %v443_v51, %v2571_v21  ;;  %v503_v7 = vrot.slane %v443_v51, %v2575_v29 }
 0x14a   :  { %v444_v4 = vmax.f32 %v428_v59, 0.0  ;;  %v413_v6 = vsub.f32 %v304_v1, %v384_v60  ;;  %v507_v8 = vrot.slane %v443_v51, %v2577_v30  ;;  %v1984_v9 = vsel %vm1838_vm2, %v1983_v0, %v1979_v55  ;;  %v386_v25 = vpop.xlane.xlu1 %385 }
 0x14b   :  { %v988_v11 = vcombine.low %v479_v61, %v483_v62  ;;  %v989_v18 = vcombine.low %v487_v63, %v491_v2  ;;  %v990_v22 = vcombine.low %v495_v3, %v499_v5  ;;  %v1988_v31 = vrot.slane %v386_v25, %v2561_v15 }
 0x14c   :  { %v429_v23 = vadd.f32 1.0, %v413_v6  ;;  %v991_v26 = vcombine.low %v503_v7, %v507_v8  ;;  %v511_v27 = vrot.slane %v444_v4, %v2559_v14  ;;  %v515_v28 = vrot.slane %v444_v4, %v2563_v16 }
 0x14d   :  { %v306_v32 = vpop.xlane.xlu0 %305  ;;  %v998_v33 = vrot.slane %v988_v11, %v2579_v34  ;;  %v1005_v35 = vrot.slane %v989_v18, %v2579_v34  ;;  %v1012_v36 = vrot.slane %v990_v22, %v2579_v34  ;;  %v519_v41 = vrot.slane %v444_v4, %v2565_v17 }
 0x14e   :  { %v2622_v38 = vmax.f32 %v429_v23, 0.0  ;;  %v414_v39 = vsub.f32 %v306_v32, %v386_v25  ;;  %v1019_v40 = vrot.slane %v991_v26, %v2579_v34  ;;  %v1989_v42 = vsel %vm1845_vm3, %v1988_v31, %v1984_v9  ;;  %v388_v52 = vpop.xlane.xlu1 %387 }
 0x14f   :  { %v1020_v46 = vcombine.low %v998_v33, %v1005_v35  ;;  %v523_v47 = vrot.slane %v444_v4, %v2567_v19  ;;  %v527_v48 = vrot.slane %v444_v4, %v2569_v20  ;;  %v531_v59 = vrot.slane %v444_v4, %v2571_v21 }
 0x150   :  { %v430_v51 = vadd.f32 1.0, %v414_v39  ;;  %v1021_v55 = vcombine.low %v1012_v36, %v1019_v40  ;;  %v535_v60 = vrot.slane %v444_v4, %v2575_v29  ;;  %v1993_v61 = vrot.slane %v388_v52, %v2573_v24 }
 0x151   :  { %v308_v62 = vpop.xlane.xlu0 %307  ;;  %v1028_v63 = vrot.slane %v1020_v46, %v2579_v34  ;;  %v539_v0 = vrot.slane %v444_v4, %v2577_v30  ;;  %v1037_v1 = vcombine.low %v511_v27, %v515_v28  ;;  %v1038_v6 = vcombine.low %v519_v41, %v523_v47 }
 0x152   :  { %v2634_v2 = vmax.f32 %v430_v51, 0.0  ;;  %v415_v3 = vsub.f32 %v308_v62, %v388_v52  ;;  %v1035_v5 = vrot.slane %v1021_v55, %v2579_v34  ;;  %v1994_v7 = vsel %vm1852_vm4, %v1993_v61, %v1989_v42  ;;  %v390_v23 = vpop.xlane.xlu1 %389 }
 0x153   :  { %v1039_v8 = vcombine.low %v527_v48, %v531_v59  ;;  %v1040_v9 = vcombine.low %v535_v60, %v539_v0  ;;  %v1047_v11 = vrot.slane %v1037_v1, %v2579_v34  ;;  %v1054_v25 = vrot.slane %v1038_v6, %v2579_v34 }
 0x154   :  { %v431_v18 = vadd.f32 1.0, %v415_v3  ;;  %v1036_v22 = vcombine.low %v1028_v63, %v1035_v5  ;;  %v543_v4 = vrot.slane %v2622_v38, %v2559_v14  ;;  %v1998_v26 = vrot.slane %v390_v23, %v2581_v37 }
 0x155   :  { %v310_v27 = vpop.xlane.xlu0 %309  ;;  %v1061_v28 = vrot.slane %v1039_v8, %v2579_v34  ;;  %v1068_v31 = vrot.slane %v1040_v9, %v2579_v34  ;;  %v547_v32 = vrot.slane %v2622_v38, %v2563_v16  ;;  %v1069_v36 = vcombine.low %v1047_v11, %v1054_v25 }
 0x156   :  { %v2647_v33 = vmax.f32 %v431_v18, 0.0  ;;  %1773 = vperm.xlu0 %2163, %v1036_v22   ;;  %v416_v35 = vsub.f32 %v310_v27, %v390_v23  ;;  %v551_v39 = vrot.slane %v2622_v38, %v2565_v17  ;;  %v1999_v40 = vsel %vm1859_vm5, %v1998_v26, %v1994_v7  ;;  %v392_v51 = vpop.xlane.xlu1 %391 }
 0x157   :  { %v1070_v41 = vcombine.low %v1061_v28, %v1068_v31  ;;  %v555_v42 = vrot.slane %v2622_v38, %v2567_v19  ;;  %v559_v46 = vrot.slane %v2622_v38, %v2569_v20  ;;  %v1077_v48 = vrot.slane %v1069_v36, %v2579_v34 }
 0x158   :  { %v432_v47 = vadd.f32 1.0, %v416_v35  ;;  %v563_v52 = vrot.slane %v2622_v38, %v2571_v21  ;;  %v567_v55 = vrot.slane %v2622_v38, %v2575_v29  ;;  %v2003_v60 = vrot.slane %v392_v51, %v2583_v43 }
 0x159   :  { %v1084_v59 = vrot.slane %v1070_v41, %v2579_v34  ;;  %v312_v61 = vpop.xlane.xlu0 %311  ;;  %v571_v62 = vrot.slane %v2622_v38, %v2577_v30  ;;  %v1086_v63 = vcombine.low %v543_v4, %v547_v32  ;;  %v1087_v3 = vcombine.low %v551_v39, %v555_v42 }
 0x15a   :  { %v2665_v0 = vmax.f32 %v432_v47, 0.0  ;;  %v417_v1 = vsub.f32 %v312_v61, %v392_v51  ;;  %v1088_v5 = vcombine.low %v559_v46, %v563_v52  ;;  %v2004_v7 = vsel %vm1866_vm6, %v2003_v60, %v1999_v40  ;;  %v394_v23 = vpop.xlane.xlu1 %393 }
 0x15b   :  { %v1085_v6 = vcombine.low %v1077_v48, %v1084_v59  ;;  %v1089_v8 = vcombine.low %v567_v55, %v571_v62  ;;  %v1096_v9 = vrot.slane %v1086_v63, %v2579_v34  ;;  %v1103_v18 = vrot.slane %v1087_v3, %v2579_v34 }
 0x15c   :  { %v433_v11 = vadd.f32 1.0, %v417_v1  ;;  %v1110_v22 = vrot.slane %v1088_v5, %v2579_v34  ;;  %v575_v38 = vrot.slane %v2634_v2, %v2559_v14  ;;  %v2008_v4 = vrot.slane %v394_v23, %v2585_v44 }
 0x15d   :  { %1776 = vperm.xlu1 %2164, %v1085_v6   ;;  %v1117_v25 = vrot.slane %v1089_v8, %v2579_v34  ;;  %v314_v26 = vpop.xlane.xlu0 %313  ;;  %v579_v27 = vrot.slane %v2634_v2, %v2563_v16  ;;  %v583_v28 = vrot.slane %v2634_v2, %v2565_v17  ;;  %v1118_v32 = vcombine.low %v1096_v9, %v1103_v18 }
 0x15e   :  { %v2679_v31 = vmax.f32 %v433_v11, 0.0  ;;  %v418_v35 = vsub.f32 %v314_v26, %v394_v23  ;;  %v587_v36 = vrot.slane %v2634_v2, %v2567_v19  ;;  %v2009_v40 = vsel %vm1873_vm7, %v2008_v4, %v2004_v7  ;;  %v396_v52 = vpop.xlane.xlu1 %395 }
 0x15f   :  { %v1119_v39 = vcombine.low %v1110_v22, %v1117_v25  ;;  %v591_v41 = vrot.slane %v2634_v2, %v2569_v20  ;;  %v595_v42 = vrot.slane %v2634_v2, %v2571_v21  ;;  %v1126_v46 = vrot.slane %v1118_v32, %v2579_v34 }
 0x160   :  { %v434_v47 = vadd.f32 1.0, %v418_v35  ;;  %v599_v48 = vrot.slane %v2634_v2, %v2575_v29  ;;  %v603_v51 = vrot.slane %v2634_v2, %v2577_v30  ;;  %v1135_v59 = vcombine.low %v575_v38, %v579_v27 }
 0x161   :  { %v1133_v55 = vrot.slane %v1119_v39, %v2579_v34  ;;  %v1136_v60 = vcombine.low %v583_v28, %v587_v36  ;;  %v1137_v61 = vcombine.low %v591_v41, %v595_v42  ;;  %v316_v62 = vpop.xlane.xlu0 %315  ;;  %v2013_v3 = vrot.slane %v396_v52, %v2587_v45 }
 0x162   :  { %v2694_v63 = vmax.f32 %v434_v47, 0.0  ;;  %v1138_v1 = vcombine.low %v599_v48, %v603_v51  ;;  %v419_v5 = vsub.f32 %v316_v62, %v396_v52  ;;  %v1145_v7 = vrot.slane %v1135_v59, %v2579_v34  ;;  %v398_v26 = vpop.xlane.xlu1 %397 }
 0x163   :  { %v1134_v6 = vcombine.low %v1126_v46, %v1133_v55  ;;  %v1152_v8 = vrot.slane %v1136_v60, %v2579_v34  ;;  %v1159_v2 = vrot.slane %v1137_v61, %v2579_v34  ;;  %v2014_v11 = vsel %vm1880_vm8, %v2013_v3, %v2009_v40 }
 0x164   :  { %v1166_v9 = vrot.slane %v1138_v1, %v2579_v34  ;;  %v435_v18 = vadd.f32 1.0, %v419_v5  ;;  %v607_v22 = vrot.slane %v2647_v33, %v2559_v14  ;;  %v611_v38 = vrot.slane %v2647_v33, %v2563_v16 }
 0x165   :  { %1779 = vperm.xlu1 %2164, %v1134_v6   ;;  %v1167_v23 = vcombine.low %v1145_v7, %v1152_v8  ;;  %v615_v25 = vrot.slane %v2647_v33, %v2565_v17  ;;  %v619_v4 = vrot.slane %v2647_v33, %v2567_v19  ;;  %v623_v32 = vrot.slane %v2647_v33, %v2569_v20  ;;  %v318_v36 = vpop.xlane.xlu0 %317 }
 0x166   :  { %v1168_v27 = vcombine.low %v1159_v2, %v1166_v9  ;;  %v2710_v28 = vmax.f32 %v435_v18, 0.0  ;;  %v627_v35 = vrot.slane %v2647_v33, %v2571_v21  ;;  %v631_v40 = vrot.slane %v2647_v33, %v2575_v29  ;;  %v400_v18 = vpop.xlane.xlu1 %399 }
 0x167   :  { %v1175_v39 = vrot.slane %v1167_v23, %v2579_v34  ;;  %v635_v41 = vrot.slane %v2647_v33, %v2577_v30  ;;  %v1184_v42 = vcombine.low %v607_v22, %v611_v38  ;;  %v1185_v47 = vcombine.low %v615_v25, %v619_v4 }
 0x168   :  { %v1182_v46 = vrot.slane %v1168_v27, %v2579_v34  ;;  %v1186_v48 = vcombine.low %v623_v32, %v627_v35  ;;  %v2018_v51 = vrot.slane %v398_v26, %v2591_v49  ;;  %v420_v59 = vsub.f32 %v318_v36, %v398_v26 }
 0x169   :  { %v1187_v52 = vcombine.low %v631_v40, %v635_v41  ;;  %v1194_v55 = vrot.slane %v1184_v42, %v2579_v34  ;;  %v639_v60 = vrot.slane %v2665_v0, %v2559_v14  ;;  %v1201_v62 = vrot.slane %v1185_v47, %v2579_v34  ;;  %v320_v22 = vpop.xlane.xlu0 %319 }
 0x16a   :  { %v1183_v61 = vcombine.low %v1175_v39, %v1182_v46  ;;  %v1208_v1 = vrot.slane %v1186_v48, %v2579_v34  ;;  %v2019_v33 = vsel %vm1887_vm9, %v2018_v51, %v2014_v11  ;;  %v436_v5 = vadd.f32 1.0, %v420_v59 }
 0x16b   :  { %v1215_v3 = vrot.slane %v1187_v52, %v2579_v34  ;;  %v643_v6 = vrot.slane %v2665_v0, %v2563_v16  ;;  %v647_v7 = vrot.slane %v2665_v0, %v2565_v17  ;;  %v1216_v8 = vcombine.low %v1194_v55, %v1201_v62 }
 0x16c   :  { %1782 = vperm.xlu1 %2164, %v1183_v61   ;;  %v651_v2 = vrot.slane %v2665_v0, %v2567_v19  ;;  %v655_v9 = vrot.slane %v2665_v0, %v2569_v20  ;;  %v659_v11 = vrot.slane %v2665_v0, %v2571_v21  ;;  %v2740_v38 = vmax.f32 %v436_v5, 0.0 }
 0x16d   :  { %v1217_v23 = vcombine.low %v1208_v1, %v1215_v3  ;;  %v663_v25 = vrot.slane %v2665_v0, %v2575_v29  ;;  %v667_v4 = vrot.slane %v2665_v0, %v2577_v30  ;;  %v1224_v26 = vrot.slane %v1216_v8, %v2579_v34  ;;  %v402_v1 = vpop.xlane.xlu1 %401 }
 0x16e   :  { %v1233_v27 = vcombine.low %v639_v60, %v643_v6  ;;  %v1234_v32 = vcombine.low %v647_v7, %v651_v2  ;;  %v1235_v35 = vcombine.low %v655_v9, %v659_v11  ;;  %v2023_v40 = vrot.slane %v400_v18, %v2593_v50  ;;  %v322_v7 = vpop.xlane.xlu0 %321 }
 0x16f   :  { %v1231_v36 = vrot.slane %v1217_v23, %v2579_v34  ;;  %v1236_v39 = vcombine.low %v663_v25, %v667_v4  ;;  %v421_v41 = vsub.f32 %v320_v22, %v400_v18  ;;  %v671_v0 = vrot.slane %v2679_v31, %v2559_v14 }
 0x170   :  { %v1243_v42 = vrot.slane %v1233_v27, %v2579_v34  ;;  %v1250_v46 = vrot.slane %v1234_v32, %v2579_v34  ;;  %v1257_v47 = vrot.slane %v1235_v35, %v2579_v34  ;;  %v2024_v52 = vsel %vm1894_vm10, %v2023_v40, %v2019_v33 }
 0x171   :  { %v1232_v48 = vcombine.low %v1224_v26, %v1231_v36  ;;  %v1264_v51 = vrot.slane %v1236_v39, %v2579_v34  ;;  %v437_v55 = vadd.f32 1.0, %v421_v41  ;;  %v675_v60 = vrot.slane %v2679_v31, %v2563_v16 }
 0x172   :  { %v1265_v59 = vcombine.low %v1243_v42, %v1250_v46  ;;  %v679_v61 = vrot.slane %v2679_v31, %v2565_v17  ;;  %v683_v62 = vrot.slane %v2679_v31, %v2567_v19  ;;  %v687_v6 = vrot.slane %v2679_v31, %v2569_v20 }
 0x173   :  { %1785 = vperm.xlu1 %2164, %v1232_v48   ;;  %v1266_v3 = vcombine.low %v1257_v47, %v1264_v51  ;;  %v2762_v5 = vmax.f32 %v437_v55, 0.0  ;;  %v691_v33 = vrot.slane %v2679_v31, %v2571_v21  ;;  %v695_v2 = vrot.slane %v2679_v31, %v2575_v29  ;;  %v324_v55 = vpop.xlane.xlu0 %323 }
 0x174   :  { %v1273_v8 = vrot.slane %v1265_v59, %v2579_v34  ;;  %v699_v9 = vrot.slane %v2679_v31, %v2577_v30  ;;  %v1282_v11 = vcombine.low %v671_v0, %v675_v60  ;;  %v1283_v22 = vcombine.low %v679_v61, %v683_v62 }
 0x175   :  { %v1280_v18 = vrot.slane %v1266_v3, %v2579_v34  ;;  %v1284_v23 = vcombine.low %v687_v6, %v691_v33  ;;  %v2028_v25 = vrot.slane %v402_v1, %v2595_v53  ;;  %v422_v27 = vsub.f32 %v322_v7, %v402_v1 }
 0x176   :  { %v1285_v4 = vcombine.low %v695_v2, %v699_v9  ;;  %v1292_v26 = vrot.slane %v1282_v11, %v2579_v34  ;;  %v703_v32 = vrot.slane %v2694_v63, %v2559_v14  ;;  %v1299_v36 = vrot.slane %v1283_v22, %v2579_v34 }
 0x177   :  { %v1281_v35 = vcombine.low %v1273_v8, %v1280_v18  ;;  %v1306_v39 = vrot.slane %v1284_v23, %v2579_v34  ;;  %v2029_v31 = vsel %vm1901_vm11, %v2028_v25, %v2024_v52  ;;  %v438_v41 = vadd.f32 1.0, %v422_v27  ;;  %v404_v52 = vpop.xlane.xlu1 %403 }
 0x178   :  { %v1313_v40 = vrot.slane %v1285_v4, %v2579_v34  ;;  %v707_v42 = vrot.slane %v2694_v63, %v2563_v16  ;;  %v711_v46 = vrot.slane %v2694_v63, %v2565_v17  ;;  %v1314_v47 = vcombine.low %v1292_v26, %v1299_v36 }
 0x179   :  { %1788 = vperm.xlu1 %2164, %v1281_v35   ;;  %v715_v0 = vrot.slane %v2694_v63, %v2567_v19  ;;  %v719_v48 = vrot.slane %v2694_v63, %v2569_v20  ;;  %v723_v51 = vrot.slane %v2694_v63, %v2571_v21  ;;  %v2792_v60 = vmax.f32 %v438_v41, 0.0 }
 0x17a   :  { %v1315_v59 = vcombine.low %v1306_v39, %v1313_v40  ;;  %v727_v61 = vrot.slane %v2694_v63, %v2575_v29  ;;  %v731_v62 = vrot.slane %v2694_v63, %v2577_v30  ;;  %v1322_v1 = vrot.slane %v1314_v47, %v2579_v34 }
 0x17b   :  { %v1331_v3 = vcombine.low %v703_v32, %v707_v42  ;;  %v1332_v6 = vcombine.low %v711_v46, %v715_v0  ;;  %v1333_v33 = vcombine.low %v719_v48, %v723_v51  ;;  %v2033_v2 = vrot.slane %v404_v52, %v2597_v54  ;;  %v2816_v39 = vpop.xlane.xlu1 %405  ;;  %v326_v46 = vpop.xlane.xlu0 %325 }
 0x17c   :  { %v1329_v7 = vrot.slane %v1315_v59, %v2579_v34  ;;  %v1334_v8 = vcombine.low %v727_v61, %v731_v62  ;;  %v423_v9 = vsub.f32 %v324_v55, %v404_v52  ;;  %v735_v63 = vrot.slane %v2710_v28, %v2559_v14 }
 0x17d   :  { %v1341_v11 = vrot.slane %v1331_v3, %v2579_v34  ;;  %v1348_v18 = vrot.slane %v1332_v6, %v2579_v34  ;;  %v1355_v22 = vrot.slane %v1333_v33, %v2579_v34  ;;  %v2808_v4 = vsel %vm1908_vm12, %v2033_v2, %v2029_v31 }
 0x17e   :  { %v1330_v23 = vcombine.low %v1322_v1, %v1329_v7  ;;  %v1362_v25 = vrot.slane %v1334_v8, %v2579_v34  ;;  %v439_v26 = vadd.f32 1.0, %v423_v9  ;;  %v739_v32 = vrot.slane %v2710_v28, %v2563_v16 }
 0x17f   :  { %v1363_v27 = vcombine.low %v1341_v11, %v1348_v18  ;;  %v743_v35 = vrot.slane %v2710_v28, %v2565_v17  ;;  %v747_v36 = vrot.slane %v2710_v28, %v2567_v19  ;;  %v751_v31 = vrot.slane %v2710_v28, %v2569_v20 }
 0x180   :  { %1791 = vperm.xlu1 %2164, %v1330_v23   ;;  %v1364_v40 = vcombine.low %v1355_v22, %v1362_v25  ;;  %v2818_v41 = vmax.f32 %v439_v26, 0.0  ;;  %v755_v42 = vrot.slane %v2710_v28, %v2571_v21  ;;  %v759_v0 = vrot.slane %v2710_v28, %v2575_v29  ;;  %v2845_v22 = vpop.xlane.xlu1 %407 }
 0x181   :  { %v1371_v47 = vrot.slane %v1363_v27, %v2579_v34  ;;  %v763_v48 = vrot.slane %v2710_v28, %v2577_v30  ;;  %v1380_v51 = vcombine.low %v735_v63, %v739_v32  ;;  %v1381_v55 = vcombine.low %v743_v35, %v747_v36  ;;  %v328_v27 = vpop.xlane.xlu0 %327 }
 0x182   :  { %v1378_v52 = vrot.slane %v1364_v40, %v2579_v34  ;;  %v1382_v59 = vcombine.low %v751_v31, %v755_v42  ;;  %v2038_v61 = vrot.slane %v2816_v39, %v2600_v56  ;;  %v424_v3 = vsub.f32 %v326_v46, %v2816_v39 }
 0x183   :  { %v1383_v62 = vcombine.low %v759_v0, %v763_v48  ;;  %v1390_v1 = vrot.slane %v1380_v51, %v2579_v34  ;;  %v767_v6 = vrot.slane %v2740_v38, %v2559_v14  ;;  %v1397_v7 = vrot.slane %v1381_v55, %v2579_v34 }
 0x184   :  { %v1379_v33 = vcombine.low %v1371_v47, %v1378_v52  ;;  %v1404_v28 = vrot.slane %v1382_v59, %v2579_v34  ;;  %v771_v8 = vrot.slane %v2740_v38, %v2563_v16  ;;  %v440_v9 = vadd.f32 1.0, %v424_v3 }
 0x185   :  { %v1411_v2 = vrot.slane %v1383_v62, %v2579_v34  ;;  %v775_v11 = vrot.slane %v2740_v38, %v2565_v17  ;;  %v779_v18 = vrot.slane %v2740_v38, %v2567_v19  ;;  %v1412_v63 = vcombine.low %v1390_v1, %v1397_v7 }
 0x186   :  { %1794 = vperm.xlu1 %2164, %v1379_v33   ;;  %v783_v23 = vrot.slane %v2740_v38, %v2569_v20  ;;  %v787_v25 = vrot.slane %v2740_v38, %v2571_v21  ;;  %v791_v26 = vrot.slane %v2740_v38, %v2575_v29  ;;  %v2853_v35 = vmax.f32 %v440_v9, 0.0  ;;  %v2878_v9 = vpop.xlane.xlu1 %409 }
 0x187   :  { %v1413_v32 = vcombine.low %v1404_v28, %v1411_v2  ;;  %v795_v36 = vrot.slane %v2740_v38, %v2577_v30  ;;  %v1429_v40 = vcombine.low %v767_v6, %v771_v8  ;;  %v1420_v31 = vrot.slane %v1412_v63, %v2579_v34 }
 0x188   :  { %v1430_v42 = vcombine.low %v775_v11, %v779_v18  ;;  %v1431_v46 = vcombine.low %v783_v23, %v787_v25  ;;  %v2043_v47 = vrot.slane %v2845_v22, %v2602_v57  ;;  %v425_v52 = vsub.f32 %v328_v27, %v2845_v22  ;;  %v330_v11 = vpop.xlane.xlu0 %329 }
 0x189   :  { %v1427_v0 = vrot.slane %v1413_v32, %v2579_v34  ;;  %v1432_v48 = vcombine.low %v791_v26, %v795_v36  ;;  %v1439_v51 = vrot.slane %v1429_v40, %v2579_v34  ;;  %v799_v38 = vrot.slane %v2762_v5, %v2559_v14 }
 0x18a   :  { %v1446_v55 = vrot.slane %v1430_v42, %v2579_v34  ;;  %v1453_v59 = vrot.slane %v1431_v46, %v2579_v34  ;;  %v803_v62 = vrot.slane %v2762_v5, %v2563_v16  ;;  %v441_v6 = vadd.f32 1.0, %v425_v52 }
 0x18b   :  { %v1428_v1 = vcombine.low %v1420_v31, %v1427_v0  ;;  %v1460_v3 = vrot.slane %v1432_v48, %v2579_v34  ;;  %v807_v33 = vrot.slane %v2762_v5, %v2565_v17  ;;  %v811_v28 = vrot.slane %v2762_v5, %v2567_v19 }
 0x18c   :  { %v1461_v7 = vcombine.low %v1439_v51, %v1446_v55  ;;  %v815_v8 = vrot.slane %v2762_v5, %v2569_v20  ;;  %v819_v2 = vrot.slane %v2762_v5, %v2571_v21  ;;  %v2880_v63 = vmax.f32 %v441_v6, 0.0 }
 0x18d   :  { %1797 = vperm.xlu1 %2164, %v1428_v1   ;;  %v1462_v18 = vcombine.low %v1453_v59, %v1460_v3  ;;  %v823_v23 = vrot.slane %v2762_v5, %v2575_v29  ;;  %v827_v25 = vrot.slane %v2762_v5, %v2577_v30  ;;  %v1478_v27 = vcombine.low %v799_v38, %v803_v62 }
 0x18e   :  { %v1469_v26 = vrot.slane %v1461_v7, %v2579_v34  ;;  %v1479_v32 = vcombine.low %v807_v33, %v811_v28  ;;  %v1480_v36 = vcombine.low %v815_v8, %v819_v2  ;;  %v2048_v42 = vrot.slane %v2878_v9, %v2604_v58 }
 0x18f   :  { %v1476_v40 = vrot.slane %v1462_v18, %v2579_v34  ;;  %v1481_v31 = vcombine.low %v823_v23, %v827_v25  ;;  %v426_v46 = vsub.f32 %v330_v11, %v2878_v9  ;;  %v1488_v0 = vrot.slane %v1478_v27, %v2579_v34 }
 0x190   :  { %v1495_v48 = vrot.slane %v1479_v32, %v2579_v34  ;;  %v1502_v51 = vrot.slane %v1480_v36, %v2579_v34  ;;  %v831_v5 = vrot.slane %v2792_v60, %v2559_v14  ;;  %v835_v38 = vrot.slane %v2792_v60, %v2563_v16 }
 0x191   :  { %v1477_v52 = vcombine.low %v1469_v26, %v1476_v40  ;;  %v1509_v55 = vrot.slane %v1481_v31, %v2579_v34  ;;  %v442_v59 = vadd.f32 1.0, %v426_v46  ;;  %v839_v1 = vrot.slane %v2792_v60, %v2565_v17 }
 0x192   :  { %v1510_v62 = vcombine.low %v1488_v0, %v1495_v48  ;;  %v843_v3 = vrot.slane %v2792_v60, %v2567_v19  ;;  %v847_v6 = vrot.slane %v2792_v60, %v2569_v20  ;;  %v851_v28 = vrot.slane %v2792_v60, %v2571_v21 }
 0x193   :  { %1800 = vperm.xlu0 %2163, %v1477_v52   ;;  %v1511_v33 = vcombine.low %v1502_v51, %v1509_v55  ;;  %v2905_v7 = vmax.f32 %v442_v59, 0.0  ;;  %v855_v8 = vrot.slane %v2792_v60, %v2575_v29  ;;  %v859_v11 = vrot.slane %v2792_v60, %v2577_v30 }
 0x194   :  { %v1518_v2 = vrot.slane %v1510_v62, %v2579_v34  ;;  %v1527_v18 = vcombine.low %v831_v5, %v835_v38  ;;  %v1528_v23 = vcombine.low %v839_v1, %v843_v3  ;;  %v1529_v26 = vcombine.low %v847_v6, %v851_v28 }
 0x195   :  { %v1525_v25 = vrot.slane %v1511_v33, %v2579_v34  ;;  %v863_v27 = vrot.slane %v2818_v41, %v2559_v14  ;;  %v867_v32 = vrot.slane %v2818_v41, %v2563_v16  ;;  %v1530_v36 = vcombine.low %v855_v8, %v859_v11 }
 0x196   :  { %v1537_v40 = vrot.slane %v1527_v18, %v2579_v34  ;;  %v1544_v31 = vrot.slane %v1528_v23, %v2579_v34  ;;  %v871_v46 = vrot.slane %v2818_v41, %v2565_v17  ;;  %v1551_v0 = vrot.slane %v1529_v26, %v2579_v34 }
 0x197   :  { %v1526_v60 = vcombine.low %v1518_v2, %v1525_v25  ;;  %v875_v48 = vrot.slane %v2818_v41, %v2567_v19  ;;  %v879_v51 = vrot.slane %v2818_v41, %v2569_v20  ;;  %v1558_v5 = vrot.slane %v1530_v36, %v2579_v34 }
 0x198   :  { %v1559_v52 = vcombine.low %v1537_v40, %v1544_v31  ;;  %v883_v55 = vrot.slane %v2818_v41, %v2571_v21  ;;  %v887_v59 = vrot.slane %v2818_v41, %v2575_v29  ;;  %v891_v38 = vrot.slane %v2818_v41, %v2577_v30 }
 0x199   :  { %1803 = vperm.xlu1 %2164, %v1526_v60   ;;  %v1576_v62 = vcombine.low %v863_v27, %v867_v32  ;;  %v1577_v1 = vcombine.low %v871_v46, %v875_v48  ;;  %v895_v3 = vrot.slane %v2853_v35, %v2559_v14  ;;  %v1560_v6 = vcombine.low %v1551_v0, %v1558_v5 }
 0x19a   :  { %v1567_v33 = vrot.slane %v1559_v52, %v2579_v34  ;;  %v1578_v28 = vcombine.low %v879_v51, %v883_v55  ;;  %v899_v8 = vrot.slane %v2853_v35, %v2563_v16  ;;  %v1579_v2 = vcombine.low %v887_v59, %v891_v38 }
 0x19b   :  { %v1586_v11 = vrot.slane %v1576_v62, %v2579_v34  ;;  %v1593_v18 = vrot.slane %v1577_v1, %v2579_v34  ;;  %v903_v41 = vrot.slane %v2853_v35, %v2565_v17  ;;  %v1574_v23 = vrot.slane %v1560_v6, %v2579_v34 }
 0x19c   :  { %v1600_v25 = vrot.slane %v1578_v28, %v2579_v34  ;;  %v907_v26 = vrot.slane %v2853_v35, %v2567_v19  ;;  %v911_v27 = vrot.slane %v2853_v35, %v2569_v20  ;;  %v1607_v32 = vrot.slane %v1579_v2, %v2579_v34 }
 0x19d   :  { %v1608_v36 = vcombine.low %v1586_v11, %v1593_v18  ;;  %v915_v40 = vrot.slane %v2853_v35, %v2571_v21  ;;  %v919_v31 = vrot.slane %v2853_v35, %v2575_v29  ;;  %v1575_v46 = vcombine.low %v1567_v33, %v1574_v23 }
 0x19e   :  { %v923_v60 = vrot.slane %v2853_v35, %v2577_v30  ;;  %v1625_v0 = vcombine.low %v895_v3, %v899_v8  ;;  %v1626_v48 = vcombine.low %v903_v41, %v907_v26  ;;  %v1609_v51 = vcombine.low %v1600_v25, %v1607_v32 }
 0x19f   :  { %v1616_v5 = vrot.slane %v1608_v36, %v2579_v34  ;;  %v1627_v52 = vcombine.low %v911_v27, %v915_v40  ;;  %v927_v55 = vrot.slane %v2880_v63, %v2559_v14  ;;  %1806 = vperm.xlu0 %2163, %v1575_v46   ;;  %v931_v1 = vrot.slane %v2880_v63, %v2563_v16 }
 0x1a0   :  { %v1628_v59 = vcombine.low %v919_v31, %v923_v60  ;;  %v1635_v38 = vrot.slane %v1625_v0, %v2579_v34  ;;  %v1642_v62 = vrot.slane %v1626_v48, %v2579_v34  ;;  %v1623_v35 = vrot.slane %v1609_v51, %v2579_v34 }
 0x1a1   :  { %v1649_v3 = vrot.slane %v1627_v52, %v2579_v34  ;;  %v935_v6 = vrot.slane %v2880_v63, %v2565_v17  ;;  %v939_v33 = vrot.slane %v2880_v63, %v2567_v19  ;;  %v943_v2 = vrot.slane %v2880_v63, %v2569_v20 }
 0x1a2   :  { %v1656_v28 = vrot.slane %v1628_v59, %v2579_v34  ;;  %v1657_v8 = vcombine.low %v1635_v38, %v1642_v62  ;;  %v947_v11 = vrot.slane %v2880_v63, %v2571_v21  ;;  %v1624_v18 = vcombine.low %v1616_v5, %v1623_v35 }
 0x1a3   :  { %v951_v41 = vrot.slane %v2880_v63, %v2575_v29  ;;  %v955_v23 = vrot.slane %v2880_v63, %v2577_v30  ;;  %v1674_v25 = vcombine.low %v927_v55, %v931_v1  ;;  %v1675_v32 = vcombine.low %v935_v6, %v939_v33 }
 0x1a4   :  { %v1658_v26 = vcombine.low %v1649_v3, %v1656_v28  ;;  %v1665_v27 = vrot.slane %v1657_v8, %v2579_v34  ;;  %v1676_v36 = vcombine.low %v943_v2, %v947_v11  ;;  %1809 = vperm.xlu1 %2164, %v1624_v18   ;;  %v959_v46 = vrot.slane %v2905_v7, %v2559_v14 }
 0x1a5   :  { %v1677_v40 = vcombine.low %v951_v41, %v955_v23  ;;  %v1684_v31 = vrot.slane %v1674_v25, %v2579_v34  ;;  %v963_v60 = vrot.slane %v2905_v7, %v2563_v16  ;;  %v1691_v63 = vrot.slane %v1675_v32, %v2579_v34 }
 0x1a6   :  { %v1672_v0 = vrot.slane %v1658_v26, %v2579_v34  ;;  %v1698_v48 = vrot.slane %v1676_v36, %v2579_v34  ;;  %v967_v51 = vrot.slane %v2905_v7, %v2565_v17  ;;  %v971_v52 = vrot.slane %v2905_v7, %v2567_v19 }
 0x1a7   :  { %v1705_v5 = vrot.slane %v1677_v40, %v2579_v34  ;;  %v975_v14 = vrot.slane %v2905_v7, %v2569_v20  ;;  %v979_v16 = vrot.slane %v2905_v7, %v2571_v21  ;;  %v1706_v59 = vcombine.low %v1684_v31, %v1691_v63 }
 0x1a8   :  { %v1673_v55 = vcombine.low %v1665_v27, %v1672_v0  ;;  %v983_v38 = vrot.slane %v2905_v7, %v2575_v29  ;;  %v987_v62 = vrot.slane %v2905_v7, %v2577_v30  ;;  %v1723_v1 = vcombine.low %v959_v46, %v963_v60 }
 0x1a9   :  { %v1707_v17 = vcombine.low %v1698_v48, %v1705_v5  ;;  %v1724_v35 = vcombine.low %v967_v51, %v971_v52  ;;  %v1725_v3 = vcombine.low %v975_v14, %v979_v16  ;;  %v1714_v19 = vrot.slane %v1706_v59, %v2579_v34 }
 0x1aa   :  { %1812 = vperm.xlu0 %2163, %v1673_v55   ;;  %v1726_v6 = vcombine.low %v983_v38, %v987_v62  ;;  %v2039_v20 = vsel %vm1915_vm13, %v2038_v61, %v2808_v4  ;;  %v1733_v29 = vrot.slane %v1723_v1, %v2579_v34 }
 0x1ab   :  { %v1721_v21 = vrot.slane %v1707_v17, %v2579_v34  ;;  %v1740_v30 = vrot.slane %v1724_v35, %v2579_v34  ;;  %v1747_v7 = vrot.slane %v1725_v3, %v2579_v34  ;;  %v2044_v28 = vsel %vm1922_vm14, %v2043_v47, %v2039_v20 }
 0x1ac   :  { %v1754_v33 = vrot.slane %v1726_v6, %v2579_v34  ;;  %v2049_v4 = vsel %vm1929_vm15, %v2048_v42, %v2044_v28 }
 0x1ad   :  { %v1722_v8 = vcombine.low %v1714_v19, %v1721_v21  ;;  %v1755_v2 = vcombine.low %v1733_v29, %v1740_v30  ;;  %2051 = vst [vmem:[#allocation8] sm:$0x1] %v2049_v4 }
 0x1ae   :  { %v1756_v39 = vcombine.low %v1747_v7, %v1754_v33 }
 0x1af   :  { %1815 = vperm.xlu1 %2164, %v1722_v8   ;;  %v1763_v61 = vrot.slane %v1755_v2, %v2579_v34 }
 0x1b0   :  { %v1770_v11 = vrot.slane %v1756_v39, %v2579_v34 }
 0x1b2   :  { %v1771_v18 = vcombine.low %v1763_v61, %v1770_v11 }
 0x1b4   :  { %1818 = vperm.xlu0 %2163, %v1771_v18  }
 0x1d5   :  { %v1774_v32 = vpop.permute.xlu0 %1773 }
 0x1d6   :  { %v1825_v31 = vrot.slane %v1774_v32, %v2553_v10 }
 0x1dc   :  { %v1777_v41 = vpop.permute.xlu1 %1776 }
 0x1dd   :  { %v1830_v42 = vrot.slane %v1777_v41, %v2555_v12 }
 0x1df   :  { %v1832_v63 = vsel %vm1831_vm1, %v1830_v42, %v1825_v31  ;;  %vm1948_vm1 = vcmask 1040384  }
 0x1e4   :  { %v1780_v22 = vpop.permute.xlu1 %1779 }
 0x1e5   :  { %v1837_v36 = vrot.slane %v1780_v22, %v2557_v13 }
 0x1e7   :  { %v1839_v51 = vsel %vm1838_vm2, %v1837_v36, %v1832_v63 }
 0x1eb   :  { %v1783_v23 = vpop.permute.xlu1 %1782 }
 0x1ec   :  { %v1844_v46 = vrot.slane %v1783_v23, %v2561_v15 }
 0x1ee   :  { %v1846_v12 = vsel %vm1845_vm3, %v1844_v46, %v1839_v51 }
 0x1f2   :  { %v1786_v47 = vpop.permute.xlu1 %1785 }
 0x1f3   :  { %v1851_v0 = vrot.slane %v1786_v47, %v2573_v24 }
 0x1f5   :  { %v1853_v10 = vsel %vm1852_vm4, %v1851_v0, %v1846_v12 }
 0x1f8   :  { %v1789_v25 = vpop.permute.xlu1 %1788 }
 0x1f9   :  { %v1858_v48 = vrot.slane %v1789_v25, %v2581_v37 }
 0x1fb   :  { %v1860_v24 = vsel %vm1859_vm5, %v1858_v48, %v1853_v10 }
 0x1ff   :  { %v1792_v26 = vpop.permute.xlu1 %1791 }
 0x200   :  { %v1865_v5 = vrot.slane %v1792_v26, %v2583_v43 }
 0x202   :  { %v1867_v37 = vsel %vm1866_vm6, %v1865_v5, %v1860_v24 }
 0x205   :  { %v1795_v27 = vpop.permute.xlu1 %1794 }
 0x206   :  { %v1872_v13 = vrot.slane %v1795_v27, %v2585_v44 }
 0x208   :  { %v1874_v43 = vsel %vm1873_vm7, %v1872_v13, %v1867_v37 }
 0x20c   :  { %v1798_v9 = vpop.permute.xlu1 %1797 }
 0x20d   :  { %v1879_v15 = vrot.slane %v1798_v9, %v2587_v45 }
 0x20f   :  { %v1881_v44 = vsel %vm1880_vm8, %v1879_v15, %v1874_v43 }
 0x212   :  { %v1801_v40 = vpop.permute.xlu0 %1800 }
 0x213   :  { %v1886_v16 = vrot.slane %v1801_v40, %v2591_v49 }
 0x215   :  { %v1888_v45 = vsel %vm1887_vm9, %v1886_v16, %v1881_v44 }
 0x218   :  { %v1804_v60 = vpop.permute.xlu1 %1803 }
 0x219   :  { %v1893_v55 = vrot.slane %v1804_v60, %v2593_v50 }
 0x21b   :  { %v1895_v49 = vsel %vm1894_vm10, %v1893_v55, %v1888_v45 }
 0x21e   :  { %v1807_v52 = vpop.permute.xlu0 %1806 }
 0x21f   :  { %v1900_v38 = vrot.slane %v1807_v52, %v2595_v53 }
 0x221   :  { %v1902_v50 = vsel %vm1901_vm11, %v1900_v38, %v1895_v49 }
 0x223   :  { %v1810_v14 = vpop.permute.xlu1 %1809 }
 0x224   :  { %v1907_v17 = vrot.slane %v1810_v14, %v2597_v54 }
 0x226   :  { %v1909_v3 = vsel %vm1908_vm12, %v1907_v17, %v1902_v50 }
 0x229   :  { %v1813_v59 = vpop.permute.xlu0 %1812 }
 0x22a   :  { %v1914_v1 = vrot.slane %v1813_v59, %v2600_v56  ;;  %v459_v56 = vld [vmem:[%s3084_s1] sm:$0x1] }
 0x22c   :  { %v1916_v53 = vsel %vm1915_vm13, %v1914_v1, %v1909_v3 }
 0x22e   :  { %v1816_v62 = vpop.permute.xlu1 %1815 }
 0x22f   :  { %v1921_v35 = vrot.slane %v1816_v62, %v2602_v57 }
 0x231   :  { %v1923_v20 = vsel %vm1922_vm14, %v1921_v35, %v1916_v53 }
 0x233   :  { %v1819_v19 = vpop.permute.xlu0 %1818 }
 0x234   :  { %v1928_v6 = vrot.slane %v1819_v19, %v2604_v58 }
 0x236   :  { %v1930_v54 = vsel %vm1929_vm15, %v1928_v6, %v1923_v20 }
 0x237   :  { %v1937_v21 = vrot.slane %v1930_v54, %v2579_v34 }
 0x239   :  { %v1944_v57 = vrot.slane %v1937_v21, %v2579_v34 }
 0x23b   :  { %v1946_v29 = vmul.f32 %v1944_v57, %v459_v56 }
 0x23d   :  { %v1949_v30 = vsel %vm1948_vm1, %v1946_v29, 0.0 }
 0x23e   :  { %1950 = vadd.xlane.f32.xlu1 %v1949_v30 }
 0x23f   :  { %2330 = shalt.err (!%p2327_p11)
}
 0x240   :  { %s2331_s1 = scalar_lea.hbm %s3088_s5, 16 }
 0x241   :  { %p2332_p12 = scmp.ne.s32.totalorder %s3088_s5, %s2331_s1  ;;  %p2335_p13 = scmp.lt.u32.totalorder %s2331_s1, %s3088_s5 }
 0x243   :  { %p2337_p0 = pnand %p2335_p13, %p2332_p12 }
 0x245   :  { %2340 = shalt.err (!%p2337_p0)
}
 0x246   :  { %2071 = dma.vmem_to_hbm [thread:$0]  %s2069_s27, 16, %s3088_s5, [#allocation9]   ;;  %v1947_v34 = vld [vmem:[#allocation6] sm:$0x1] }
 0x247   :  { %s2393_s15 = smov [#allocation6]  }
 0x248   :  { %s2058_s25 = sshll.u32 %s2393_s15, 4  ;;  %s2059_s25 = int_to_ptr.vmem [resolvable:$true] %s2058_s25 }
 0x249   :  { %s2341_s14 = scalar_lea.vmem %s2059_s25, 16  ;;  %s2345_s16 = scalar_lea.vmem %s2059_s25, 32 }
 0x24a   :  { %p2342_p1 = scmp.ne.s32.totalorder %s2059_s25, %s2341_s14  ;;  %p2346_p2 = scmp.lt.s32.totalorder %s2059_s25, %s2059_s25 }
 0x24b   :  { %p2347_p3 = scmp.lt.s32.totalorder %s2345_s16, %s2341_s14 }
 0x24d   :  { %p2348_p4 = por %p2347_p3, %p2346_p2 }
 0x24f   :  { %p2349_p5 = pnand %p2348_p4, %p2342_p1 }
 0x2cb   :  { %v1951_v58 = vpop.xlane.xlu1 %1950 }
 0x2cc   :  { %v1952_v7 = vadd.f32 %v1951_v58, %v1947_v34 }
 0x2ce   :  { %1954 = vst.msk [vmem:[#allocation6] sm:$0x1] %vm23_vm0, %v1952_v7 }
 0x2cf   :  { %2352 = shalt.err (!%p2349_p5)
}
 0x2d0   :  { %s2353_s5 = scalar_lea.hbm %s3087_s4, 16 }
 0x2d1   :  { %p2354_p6 = scmp.ne.s32.totalorder %s3087_s4, %s2353_s5  ;;  %p2357_p7 = scmp.lt.u32.totalorder %s2353_s5, %s3087_s4 }
 0x2d3   :  { %p2359_p8 = pnand %p2357_p7, %p2354_p6 }
 0x2d5   :  { %2362 = shalt.err (!%p2359_p8)
}
 0x2d6   :  { %2061 = dma.vmem_to_hbm [thread:$0]  %s2059_s25, 16, %s3087_s4, [#allocation7]  }
 0x2d7   :  { %2375 = dma.done.wait [#allocation7], 16  }
 0x2d8   :  { %2376 = vsyncadd [#allocation7], 4294967280 }
 0x2d9   :  { %2377 = dma.done.wait [#allocation9], 16  }
 0x2da   :  { %2378 = vsyncadd [#allocation9], 4294967280 }
 0x2db   :  { %2078 = vsyncpa [#allocation7], 1 }
 0x2dc   :  { %2079 = vsyncpa [#allocation9], 1 }
 0x2dd   :  { %2080 = vsyncmov [#allocation3] }
 0x2e0   :  { %s2081_s29 = vpop.sfrf %2080 }
 0x2e1   :  { %p2130_p9 = scmp.ne.s32.totalorder %s2081_s29, 0 }
 0x2e3   :  { %2085 = shalt.err (%p2130_p9)  }

</bundles_post_ra>
